<compile_context>
chip_gen: v7x
topology: tpu7x:2x2x1
jax: 0.10.0
libtpu: 0.0.40
codegen_flags: <defaults>
</compile_context>

<pallas_src>
import jax
import jax.numpy as jnp
from jax.experimental import pallas as pl
from jax.experimental.pallas import tpu as pltpu

BN_EPS = 1e-5
_VMEM = pl.BlockSpec(memory_space=pltpu.MemorySpace.VMEM)


# ----------------------------- small helpers -----------------------------

def _round_up(x, m):
    return (x + m - 1) // m * m


def _k_tiling(K):
    """Pad K and pick a K tile (multiple of 128, <=512) that divides it."""
    if K <= 512:
        kp = _round_up(K, 32)          # e.g. first conv: 27 -> 32
        return kp, kp                  # single K step (full extent)
    kp = _round_up(K, 128)
    for tk in (512, 384, 256, 128):
        if kp % tk == 0:
            return kp, tk
    return kp, 128


def _m_tiling(M):
    """Row tile: 512 rows for large M, full (8-aligned) M if small."""
    tm = 512 if M >= 512 else _round_up(M, 8)
    return _round_up(M, tm), tm


# --------------------- fused conv-matmul + BN-stats kernel ---------------------

def _conv_stats_kernel(x_ref, w_ref, y_ref, sum_ref, ssq_ref, acc_ref):
    # Hoist ALL grid-index reads to the top of the kernel; calling
    # pl.program_id inside a pl.when body embeds an un-substitutable
    # program_id primitive in the cond branch.
    m = pl.program_id(0)
    k = pl.program_id(1)
    k_first = k == 0
    k_last = k == pl.num_programs(1) - 1
    stats_init = jnp.logical_and(m == 0, k_last)

    @pl.when(k_first)
    def _():
        acc_ref[...] = jnp.zeros_like(acc_ref)

    acc_ref[...] += jnp.dot(x_ref[...], w_ref[...],
                            preferred_element_type=jnp.float32)

    @pl.when(stats_init)
    def _():
        sum_ref[...] = jnp.zeros_like(sum_ref)
        ssq_ref[...] = jnp.zeros_like(ssq_ref)

    @pl.when(k_last)
    def _():
        y = acc_ref[...]
        y_ref[...] = y                                  # lane-dense full-Cout store
        sum_ref[...] += jnp.sum(y, axis=0, keepdims=True)
        ssq_ref[...] += jnp.sum(y * y, axis=0, keepdims=True)


def pallas_conv_stats(lhs, wmat, tm, tk):
    """lhs: (M_pad, K_pad) bf16, wmat: (K_pad, Cout) bf16.
    Returns y (M_pad, Cout) f32, per-channel sum & sumsq (1, Cout) f32."""
    M_pad, K_pad = lhs.shape
    Cout = wmat.shape[1]
    grid = (M_pad // tm, K_pad // tk)
    # NOTE: the stats outputs are revisited across the M axis, so both grid
    # axes must be "arbitrary"; fusing the BN-stat reduction into the matmul
    # (one fewer full pass over y) is worth more than megacore sharding here.
    return pl.pallas_call(
        _conv_stats_kernel,
        out_shape=(jax.ShapeDtypeStruct((M_pad, Cout), jnp.float32),
                   jax.ShapeDtypeStruct((1, Cout), jnp.float32),
                   jax.ShapeDtypeStruct((1, Cout), jnp.float32)),
        grid=grid,
        in_specs=[pl.BlockSpec((tm, tk), lambda m, k: (m, k)),
                  pl.BlockSpec((tk, Cout), lambda m, k: (k, 0))],
        out_specs=(pl.BlockSpec((tm, Cout), lambda m, k: (m, 0)),
                   pl.BlockSpec((1, Cout), lambda m, k: (0, 0)),
                   pl.BlockSpec((1, Cout), lambda m, k: (0, 0))),
        scratch_shapes=[pltpu.VMEM((tm, Cout), jnp.float32)],
        compiler_params=pltpu.CompilerParams(
            dimension_semantics=("arbitrary", "arbitrary")),
        cost_estimate=pl.CostEstimate(
            flops=2 * M_pad * K_pad * Cout,
            transcendentals=0,
            bytes_accessed=(M_pad * K_pad * 2 + K_pad * Cout * 2
                            + M_pad * Cout * 4 + 2 * Cout * 4)),
    )(lhs, wmat)


# --------------------- fused BN affine (+residual) + ReLU ---------------------

def _affine_kernel(y_ref, s_ref, b_ref, o_ref):
    out = y_ref[...] * s_ref[...] + b_ref[...]
    o_ref[...] = jnp.maximum(out, 0.0).astype(o_ref.dtype)


def _affine_res_kernel(y_ref, s_ref, b_ref, r_ref, o_ref):
    out = y_ref[...] * s_ref[...] + b_ref[...] + r_ref[...].astype(jnp.float32)
    o_ref[...] = jnp.maximum(out, 0.0).astype(o_ref.dtype)


def _affine_dual_kernel(y_ref, s_ref, b_ref, y2_ref, s2_ref, b2_ref, o_ref):
    out = (y_ref[...] * s_ref[...] + b_ref[...]
           + y2_ref[...] * s2_ref[...] + b2_ref[...])
    o_ref[...] = jnp.maximum(out, 0.0).astype(o_ref.dtype)


def _vec(v, C):
    return v.reshape(1, C).astype(jnp.float32)


def pallas_affine(y, scale, shift, tm, residual=None):
    """out = relu(y*scale + shift [+ residual]) -> bf16, tiled over rows."""
    M_pad, C = y.shape
    row = pl.BlockSpec((tm, C), lambda m: (m, 0))
    vec = pl.BlockSpec((1, C), lambda m: (0, 0))
    args = [y, _vec(scale, C), _vec(shift, C)]
    in_specs = [row, vec, vec]
    kernel = _affine_kernel
    if residual is not None:
        args.append(residual)
        in_specs.append(row)
        kernel = _affine_res_kernel
    return pl.pallas_call(
        kernel,
        out_shape=jax.ShapeDtypeStruct((M_pad, C), jnp.bfloat16),
        grid=(M_pad // tm,),
        in_specs=in_specs,
        out_specs=pl.BlockSpec((tm, C), lambda m: (m, 0)),
        compiler_params=pltpu.CompilerParams(dimension_semantics=("parallel",)),
    )(*args)


def pallas_affine_dual(y, scale, shift, y2, scale2, shift2, tm):
    """out = relu(y*s+b + y2*s2+b2): conv2-BN plus projection-shortcut-BN."""
    M_pad, C = y.shape
    row = pl.BlockSpec((tm, C), lambda m: (m, 0))
    vec = pl.BlockSpec((1, C), lambda m: (0, 0))
    return pl.pallas_call(
        _affine_dual_kernel,
        out_shape=jax.ShapeDtypeStruct((M_pad, C), jnp.bfloat16),
        grid=(M_pad // tm,),
        in_specs=[row, vec, vec, row, vec, vec],
        out_specs=pl.BlockSpec((tm, C), lambda m: (m, 0)),
        compiler_params=pltpu.CompilerParams(dimension_semantics=("parallel",)),
    )(y, _vec(scale, C), _vec(shift, C), y2, _vec(scale2, C), _vec(shift2, C))


# ----------------------------- avg-pool & linear -----------------------------

def _avgpool_kernel(x_ref, o_ref):
    o_ref[...] = jnp.mean(x_ref[...].astype(jnp.float32), axis=1, keepdims=True)


def pallas_global_avgpool(x_nlc):
    N, L, C = x_nlc.shape
    out = pl.pallas_call(
        _avgpool_kernel,
        out_shape=jax.ShapeDtypeStruct((N, 1, C), jnp.float32),
        grid=(N,),
        in_specs=[pl.BlockSpec((1, L, C), lambda n: (n, 0, 0))],
        out_specs=pl.BlockSpec((1, 1, C), lambda n: (n, 0, 0)),
        compiler_params=pltpu.CompilerParams(dimension_semantics=("parallel",)),
    )(x_nlc)
    return out.reshape(N, C)


def _linear_kernel(x_ref, w_ref, b_ref, o_ref):
    o_ref[...] = (jnp.dot(x_ref[...], w_ref[...],
                          preferred_element_type=jnp.float32) + b_ref[...])


def pallas_linear(x_bf16, wT_bf16, b):
    M = x_bf16.shape[0]
    N = wT_bf16.shape[1]
    return pl.pallas_call(
        _linear_kernel,
        out_shape=jax.ShapeDtypeStruct((M, N), jnp.float32),
        in_specs=[_VMEM, _VMEM, _VMEM],
        out_specs=_VMEM,
    )(x_bf16, wT_bf16, b.reshape(1, N))


# ----------------------------- conv / block glue -----------------------------

def _im2col(x_nhwc, kh, kw, stride, padding):
    N, H, W, C = x_nhwc.shape
    xp = jnp.pad(x_nhwc, ((0, 0), (padding, padding), (padding, padding), (0, 0)))
    Ho = (H + 2 * padding - kh) // stride + 1
    Wo = (W + 2 * padding - kw) // stride + 1
    cols = []
    for i in range(kh):
        for j in range(kw):
            cols.append(xp[:, i:i + stride * Ho:stride, j:j + stride * Wo:stride, :])
    patches = jnp.concatenate(cols, axis=-1)           # (N, Ho, Wo, kh*kw*C)
    return patches.reshape(N * Ho * Wo, kh * kw * C), (N, Ho, Wo)


def conv_bn(x_nhwc, cp, gamma, beta, stride, padding):
    """Conv (fused matmul + BN batch-stats kernel) -> scale/shift for the affine."""
    x_nhwc = x_nhwc.astype(jnp.bfloat16)
    kh, kw, cin, cout = cp['kh'], cp['kw'], cp['cin'], cp['cout']
    if kh == 1 and kw == 1:
        lhs4 = x_nhwc[:, ::stride, ::stride, :]        # 1x1 conv: no im2col
        N, Ho, Wo, _ = lhs4.shape
        lhs = lhs4.reshape(N * Ho * Wo, cin)
    else:
        lhs, (N, Ho, Wo) = _im2col(x_nhwc, kh, kw, stride, padding)
    M = N * Ho * Wo
    M_pad, tm = _m_tiling(M)
    K_pad = cp['K_pad']
    lhs = jnp.pad(lhs, ((0, M_pad - M), (0, K_pad - lhs.shape[1])))

    y, sums, ssq = pallas_conv_stats(lhs, cp['wmat'], tm, cp['tk'])

    # training-mode (biased) batch statistics; BN math stays in f32
    mean = sums[0] / M
    var = ssq[0] / M - mean * mean
    scale = gamma * jax.lax.rsqrt(var + BN_EPS)
    shift = beta - mean * scale
    meta = dict(N=N, Ho=Ho, Wo=Wo, C=cout, M=M, M_pad=M_pad, tm=tm)
    return y, scale, shift, meta


def _unflatten(flat, meta):
    return flat[:meta['M']].reshape(meta['N'], meta['Ho'], meta['Wo'], meta['C'])


def basic_block(x_nhwc, p):
    stride = p['stride']
    N, H, W, Cin = x_nhwc.shape
    cout = p['conv1']['cout']

    # conv1 -> BN -> ReLU
    y1, s1, b1, m1 = conv_bn(x_nhwc, p['conv1'], p['bn1_g'], p['bn1_b'], stride, 1)
    h = _unflatten(pallas_affine(y1, s1, b1, m1['tm']), m1)

    # conv2 -> BN (affine fused with residual add + ReLU below)
    y2, s2, b2, m2 = conv_bn(h, p['conv2'], p['bn2_g'], p['bn2_b'], 1, 1)

    if stride != 1 or Cin != cout:
        # projection shortcut: 1x1 conv + BN fused into the same epilogue
        ysc, ssc, bsc, _ = conv_bn(x_nhwc, p['sc'], p['sc_g'], p['sc_b'], stride, 0)
        out = pallas_affine_dual(y2, s2, b2, ysc, ssc, bsc, m2['tm'])
    else:
        res = x_nhwc.astype(jnp.bfloat16).reshape(N * H * W, Cin)
        res = jnp.pad(res, ((0, m2['M_pad'] - m2['M']), (0, 0)))
        out = pallas_affine(y2, s2, b2, m2['tm'], residual=res)
    return _unflatten(out, m2)


# --------------------------- parameters & forward ---------------------------

def _prepare_conv_weight(w_oihw):
    """(Cout, Cin, kh, kw) -> padded (K_pad, Cout) bf16 matrix matching im2col."""
    cout, cin, kh, kw = w_oihw.shape
    K = kh * kw * cin
    K_pad, tk = _k_tiling(K)
    wmat = jnp.transpose(w_oihw, (2, 3, 1, 0)).reshape(K, cout)
    wmat = jnp.pad(wmat, ((0, K_pad - K), (0, 0))).astype(jnp.bfloat16)
    return {'wmat': wmat, 'kh': kh, 'kw': kw, 'cin': cin, 'cout': cout,
            'K': K, 'K_pad': K_pad, 'tk': tk}


def init_params(key, num_block=(1, 1, 1, 1), num_classes=100):
    keys = iter(jax.random.split(key, 256))

    def conv(cout, cin, k):
        fan_in = cin * k * k
        w = jax.random.normal(next(keys), (cout, cin, k, k), jnp.float32)
        return _prepare_conv_weight(w * (2.0 / fan_in) ** 0.5)

    params = {
        'conv1': conv(64, 3, 3),
        'bn1_g': jnp.ones((64,), jnp.float32),
        'bn1_b': jnp.zeros((64,), jnp.float32),
    }
    blocks = []
    in_c = 64
    for c, s, n in zip((64, 128, 256, 512), (1, 2, 2, 2), num_block):
        for st in [s] + [1] * (n - 1):
            bp = {
                'stride': st,
                'conv1': conv(c, in_c, 3),
                'bn1_g': jnp.ones((c,), jnp.float32),
                'bn1_b': jnp.zeros((c,), jnp.float32),
                'conv2': conv(c, c, 3),
                'bn2_g': jnp.ones((c,), jnp.float32),
                'bn2_b': jnp.zeros((c,), jnp.float32),
            }
            if st != 1 or in_c != c:
                bp['sc'] = conv(c, in_c, 1)
                bp['sc_g'] = jnp.ones((c,), jnp.float32)
                bp['sc_b'] = jnp.zeros((c,), jnp.float32)
            blocks.append(bp)
            in_c = c
    params['blocks'] = blocks
    fc_w = jax.random.normal(next(keys), (num_classes, 512), jnp.float32) * (1.0 / 512) ** 0.5
    params['fc_wT'] = fc_w.T.astype(jnp.bfloat16)   # pre-transposed + cast once
    params['fc_b'] = jnp.zeros((num_classes,), jnp.float32)
    return params


def resnet_forward(params, x_nchw):
    x = jnp.transpose(x_nchw, (0, 2, 3, 1)).astype(jnp.bfloat16)   # NCHW -> NHWC
    y, s, b, m = conv_bn(x, params['conv1'], params['bn1_g'], params['bn1_b'], 1, 1)
    x = _unflatten(pallas_affine(y, s, b, m['tm']), m)
    for bp in params['blocks']:
        x = basic_block(x, bp)
    N, Ho, Wo, C = x.shape
    pooled = pallas_global_avgpool(x.reshape(N, Ho * Wo, C))       # (N, 512) f32
    logits = pallas_linear(pooled.astype(jnp.bfloat16), params['fc_wT'], params['fc_b'])
    return logits


if __name__ == "__main__":
    key = jax.random.PRNGKey(0)
    pk, xk = jax.random.split(key)
    params = init_params(pk, num_block=(1, 1, 1, 1), num_classes=100)
    x = jax.random.normal(xk, (2, 3, 16, 16), jnp.float32)   # NCHW, like PyTorch
    out = resnet_forward(params, x)
    jax.block_until_ready(out)
    assert out.shape == (2, 100) and out.dtype == jnp.float32
    print("KERNEL_OK")
</pallas_src>

<mosaic_0001>
module attributes {stable_mosaic.version = 11 : i64} {
  func.func @_conv_stats_kernel(%arg0: i32, %arg1: i32, %arg2: memref<512x32xbf16, #tpu.memory_space<vmem>>, %arg3: memref<32x64xbf16, #tpu.memory_space<vmem>>, %arg4: memref<512x64xf32, #tpu.memory_space<vmem>>, %arg5: memref<1x64xf32, #tpu.memory_space<vmem>>, %arg6: memref<1x64xf32, #tpu.memory_space<vmem>>, %arg7: memref<512x64xf32, #tpu.memory_space<vmem>>) attributes {dimension_semantics = [#tpu.dimension_semantics<arbitrary>, #tpu.dimension_semantics<arbitrary>], iteration_bounds = array<i64: 1, 1>, scalar_prefetch = 0 : i64, scratch_operands = 1 : i64, tpu.core_type = #tpu.core_type<tc>, window_params = [{transform_indices = @transform_0, window_bounds = array<i64: 512, 32>}, {transform_indices = @transform_1, window_bounds = array<i64: 32, 64>}, {transform_indices = @transform_2, window_bounds = array<i64: 512, 64>}, {pipeline_mode = #tpu.pipeline_mode<synchronous>, transform_indices = @transform_3, window_bounds = array<i64: 1, 64>}, {pipeline_mode = #tpu.pipeline_mode<synchronous>, transform_indices = @transform_4, window_bounds = array<i64: 1, 64>}]} {
    %c0_i32 = arith.constant 0 : i32
    %0 = arith.cmpi eq, %arg1, %c0_i32 : i32
    %c0_i32_0 = arith.constant 0 : i32
    %1 = arith.cmpi eq, %arg1, %c0_i32_0 : i32
    %c0_i32_1 = arith.constant 0 : i32
    %2 = arith.cmpi eq, %arg0, %c0_i32_1 : i32
    %3 = arith.andi %2, %1 : i1
    %4 = arith.extui %0 : i1 to i32
    %c0_i32_2 = arith.constant 0 : i32
    %5 = arith.cmpi ne, %4, %c0_i32_2 : i32
    scf.if %5 {
      %cst_12 = arith.constant 0.000000e+00 : f32
      %16 = vector.broadcast %cst_12 : f32 to vector<512x64xf32>
      %c0_13 = arith.constant 0 : index
      %c0_14 = arith.constant 0 : index
      %17 = vector.load %arg7[%c0_13, %c0_14] : memref<512x64xf32, #tpu.memory_space<vmem>>, vector<512x64xf32>
      tpu.vector_store %arg7[%c0_13, %c0_14], %16 {strides = array<i32>} : memref<512x64xf32, #tpu.memory_space<vmem>>, vector<512x64xf32>,
    } else {
    }
    %c0 = arith.constant 0 : index
    %c0_3 = arith.constant 0 : index
    %6 = vector.load %arg7[%c0, %c0_3] : memref<512x64xf32, #tpu.memory_space<vmem>>, vector<512x64xf32>
    %c0_4 = arith.constant 0 : index
    %c0_5 = arith.constant 0 : index
    %7 = vector.load %arg2[%c0_4, %c0_5] : memref<512x32xbf16, #tpu.memory_space<vmem>>, vector<512x32xbf16>
    %c0_6 = arith.constant 0 : index
    %c0_7 = arith.constant 0 : index
    %8 = vector.load %arg3[%c0_6, %c0_7] : memref<32x64xbf16, #tpu.memory_space<vmem>>, vector<32x64xbf16>
    %cst = arith.constant dense<0.000000e+00> : vector<512x64xf32>
    %9 = tpu.matmul %7, %8, %cst {dimension_numbers = #tpu.dot_dimension_numbers<[1], [0], [0], [1], [0, 0, 1, 1], [], []>} : vector<512x32xbf16>, vector<32x64xbf16>, vector<512x64xf32> -> vector<512x64xf32>
    %10 = arith.addf %6, %9 : vector<512x64xf32>
    %c0_8 = arith.constant 0 : index
    %c0_9 = arith.constant 0 : index
    %11 = vector.load %arg7[%c0_8, %c0_9] : memref<512x64xf32, #tpu.memory_space<vmem>>, vector<512x64xf32>
    tpu.vector_store %arg7[%c0_8, %c0_9], %10 {strides = array<i32>} : memref<512x64xf32, #tpu.memory_space<vmem>>, vector<512x64xf32>,
    %12 = arith.extui %3 : i1 to i32
    %c0_i32_10 = arith.constant 0 : i32
    %13 = arith.cmpi ne, %12, %c0_i32_10 : i32
    scf.if %13 {
      %cst_12 = arith.constant 0.000000e+00 : f32
      %16 = vector.broadcast %cst_12 : f32 to vector<1x64xf32>
      %c0_13 = arith.constant 0 : index
      %c0_14 = arith.constant 0 : index
      %17 = vector.load %arg5[%c0_13, %c0_14] : memref<1x64xf32, #tpu.memory_space<vmem>>, vector<1x64xf32>
      tpu.vector_store %arg5[%c0_13, %c0_14], %16 {strides = array<i32>} : memref<1x64xf32, #tpu.memory_space<vmem>>, vector<1x64xf32>,
      %cst_15 = arith.constant 0.000000e+00 : f32
      %18 = vector.broadcast %cst_15 : f32 to vector<1x64xf32>
      %c0_16 = arith.constant 0 : index
      %c0_17 = arith.constant 0 : index
      %19 = vector.load %arg6[%c0_16, %c0_17] : memref<1x64xf32, #tpu.memory_space<vmem>>, vector<1x64xf32>
      tpu.vector_store %arg6[%c0_16, %c0_17], %18 {strides = array<i32>} : memref<1x64xf32, #tpu.memory_space<vmem>>, vector<1x64xf32>,
    } else {
    }
    %14 = arith.extui %1 : i1 to i32
    %c0_i32_11 = arith.constant 0 : i32
    %15 = arith.cmpi ne, %14, %c0_i32_11 : i32
    scf.if %15 {
      %c0_12 = arith.constant 0 : index
      %c0_13 = arith.constant 0 : index
      %16 = vector.load %arg7[%c0_12, %c0_13] : memref<512x64xf32, #tpu.memory_space<vmem>>, vector<512x64xf32>
      %c0_14 = arith.constant 0 : index
      %c0_15 = arith.constant 0 : index
      %17 = vector.load %arg4[%c0_14, %c0_15] : memref<512x64xf32, #tpu.memory_space<vmem>>, vector<512x64xf32>
      tpu.vector_store %arg4[%c0_14, %c0_15], %16 {strides = array<i32>} : memref<512x64xf32, #tpu.memory_space<vmem>>, vector<512x64xf32>,
      %c0_16 = arith.constant 0 : index
      %c0_17 = arith.constant 0 : index
      %18 = vector.load %arg5[%c0_16, %c0_17] : memref<1x64xf32, #tpu.memory_space<vmem>>, vector<1x64xf32>
      %cst_18 = arith.constant dense<0.000000e+00> : vector<64xf32>
      %19 = vector.multi_reduction <add>, %16, %cst_18 [0] : vector<512x64xf32> to vector<64xf32>
      %20 = vector.shape_cast %19 : vector<64xf32> to vector<1x64xf32>
      %21 = arith.addf %18, %20 : vector<1x64xf32>
      %c0_19 = arith.constant 0 : index
      %c0_20 = arith.constant 0 : index
      %22 = vector.load %arg5[%c0_19, %c0_20] : memref<1x64xf32, #tpu.memory_space<vmem>>, vector<1x64xf32>
      tpu.vector_store %arg5[%c0_19, %c0_20], %21 {strides = array<i32>} : memref<1x64xf32, #tpu.memory_space<vmem>>, vector<1x64xf32>,
      %c0_21 = arith.constant 0 : index
      %c0_22 = arith.constant 0 : index
      %23 = vector.load %arg6[%c0_21, %c0_22] : memref<1x64xf32, #tpu.memory_space<vmem>>, vector<1x64xf32>
      %24 = arith.mulf %16, %16 : vector<512x64xf32>
      %cst_23 = arith.constant dense<0.000000e+00> : vector<64xf32>
      %25 = vector.multi_reduction <add>, %24, %cst_23 [0] : vector<512x64xf32> to vector<64xf32>
      %26 = vector.shape_cast %25 : vector<64xf32> to vector<1x64xf32>
      %27 = arith.addf %23, %26 : vector<1x64xf32>
      %c0_24 = arith.constant 0 : index
      %c0_25 = arith.constant 0 : index
      %28 = vector.load %arg6[%c0_24, %c0_25] : memref<1x64xf32, #tpu.memory_space<vmem>>, vector<1x64xf32>
      tpu.vector_store %arg6[%c0_24, %c0_25], %27 {strides = array<i32>} : memref<1x64xf32, #tpu.memory_space<vmem>>, vector<1x64xf32>,
    } else {
    }
    return
  }
  func.func @transform_0(%arg0: i32, %arg1: i32) -> (i32, i32) {
    %c0_i32 = arith.constant 0 : i32
    return %arg0, %arg1 : i32, i32
  }
  func.func @transform_1(%arg0: i32, %arg1: i32) -> (i32, i32) {
    %c0_i32 = arith.constant 0 : i32
    %c0_i32_0 = arith.constant 0 : i32
    return %arg1, %c0_i32 : i32, i32
  }
  func.func @transform_2(%arg0: i32, %arg1: i32) -> (i32, i32) {
    %c0_i32 = arith.constant 0 : i32
    %c0_i32_0 = arith.constant 0 : i32
    return %arg0, %c0_i32 : i32, i32
  }
  func.func @transform_3(%arg0: i32, %arg1: i32) -> (i32, i32) {
    %c0_i32 = arith.constant 0 : i32
    %c0_i32_0 = arith.constant 0 : i32
    %c0_i32_1 = arith.constant 0 : i32
    return %c0_i32, %c0_i32_0 : i32, i32
  }
  func.func @transform_4(%arg0: i32, %arg1: i32) -> (i32, i32) {
    %c0_i32 = arith.constant 0 : i32
    %c0_i32_0 = arith.constant 0 : i32
    %c0_i32_1 = arith.constant 0 : i32
    return %c0_i32, %c0_i32_0 : i32, i32
  }
}

</mosaic_0001>

<bundles_post_ra>
// kernel: tpu_custom_call.1
= control target key start
LH: loop header
LB: loop body
LE: loop exit
PB: predicated region body
PF: predicated region fallthrough
CT: control target
= control target key end

     0   :  { %10 = vsyncpa [#allocation4], 0  ;;  %vm393_vm0 = vcmask 261120   ;;  %vm24_vm1 = vcmask 523264   ;;  %v1670_v3 = vmov 0.0   ;;  %s2725_s0 = inlined_call_operand.vmem [shape: bf16[512,32], index: 0, kind: input, shape index: {}]   ;;  %s2726_s1 = inlined_call_operand.vmem [shape: bf16[32,64], index: 1, kind: input, shape index: {}]   ;;  %s2727_s2 = inlined_call_operand.vmem [shape: f32[512,64], index: 2, kind: output, shape index: {0}]   ;;  %s2728_s3 = inlined_call_operand.hbm [shape: f32[1,64], index: 3, kind: output, shape index: {1}]   ;;  %s2729_s4 = inlined_call_operand.hbm [shape: f32[1,64], index: 4, kind: output, shape index: {2}]  }
   0x1   :  { %v1588_v0 = vld [vmem:[%s2726_s1] sm:$0xff]   ;;  %v1704_v1 = vld [vmem:[%s2726_s1 + $0x8] sm:$0xff]   ;;  %27 = vst.msk [vmem:[#allocation2 + $0x10] sm:$0xff] %vm24_vm1, %v1670_v3  ;;  %25 = vst.msk [vmem:[#allocation2] sm:$0xff] %vm24_vm1, %v1670_v3 }
   0x2   :  { %1513 = vmatprep.subr.bf16.mxu0 %v1588_v0  ;;  %v1709_v2 = vld [vmem:[%s2725_s0] sm:$0xff]   ;;  %1581 = vmatprep.subr.bf16.mxu1 %v1588_v0  ;;  %26 = vst.msk [vmem:[#allocation2 + $0x8] sm:$0xff] %vm24_vm1, %v1670_v3  ;;  %28 = vst.msk [vmem:[#allocation2 + $0x18] sm:$0xff] %vm24_vm1, %v1670_v3  ;;  %v1591_v4 = vld [vmem:[%s2725_s0 + $0x8] sm:$0xff]  }
   0x3   :  { %1514 = vmatpush3.bf16.msra.mxu0 %v1588_v0  ;;  %1583 = vmatpush3.bf16.msra.mxu1 %v1588_v0  ;;  %29 = vst.msk [vmem:[#allocation2 + $0x20] sm:$0xff] %vm24_vm1, %v1670_v3  ;;  %30 = vst.msk [vmem:[#allocation2 + $0x28] sm:$0xff] %vm24_vm1, %v1670_v3  ;;  %v1592_v5 = vld [vmem:[%s2725_s0 + $0x10] sm:$0xff]   ;;  %v1593_v6 = vld [vmem:[%s2725_s0 + $0x18] sm:$0xff]  }
   0x4   :  { %31 = vst.msk [vmem:[#allocation2 + $0x30] sm:$0xff] %vm24_vm1, %v1670_v3  ;;  %32 = vst.msk [vmem:[#allocation2 + $0x38] sm:$0xff] %vm24_vm1, %v1670_v3  ;;  %1515 = vmatprep.subr.bf16.mxu0 %v1704_v1  ;;  %1517 = vmatprep.mubr.msk.bf16.mxu0 %vm393_vm0, %v1709_v2  ;;  %v1594_v7 = vld [vmem:[%s2725_s0 + $0x20] sm:$0xff]   ;;  %v1607_v9 = vld [vmem:[%s2725_s0 + $0x88] sm:$0xff]  }
   0x5   :  { %33 = vst.msk [vmem:[#allocation2 + $0x40] sm:$0xff] %vm24_vm1, %v1670_v3  ;;  %34 = vst.msk [vmem:[#allocation2 + $0x48] sm:$0xff] %vm24_vm1, %v1670_v3  ;;  %1582 = vmatprep.subr.bf16.mxu1 %v1704_v1  ;;  %v1606_v8 = vld [vmem:[%s2725_s0 + $0x80] sm:$0xff]   ;;  %v1608_v10 = vld [vmem:[%s2725_s0 + $0x90] sm:$0xff]  }
   0x6   :  { %35 = vst.msk [vmem:[#allocation2 + $0x50] sm:$0xff] %vm24_vm1, %v1670_v3  ;;  %36 = vst.msk [vmem:[#allocation2 + $0x58] sm:$0xff] %vm24_vm1, %v1670_v3  ;;  %1549 = vmatprep.mubr.msk.bf16.mxu1 %vm393_vm0, %v1606_v8  ;;  %v1595_v11 = vld [vmem:[%s2725_s0 + $0x28] sm:$0xff]   ;;  %v1596_v12 = vld [vmem:[%s2725_s0 + $0x30] sm:$0xff]  }
   0x7   :  { %37 = vst.msk [vmem:[#allocation2 + $0x60] sm:$0xff] %vm24_vm1, %v1670_v3  ;;  %38 = vst.msk [vmem:[#allocation2 + $0x68] sm:$0xff] %vm24_vm1, %v1670_v3  ;;  %1516 = vmatpush3.bf16.msra.mxu0 %v1704_v1  ;;  %1584 = vmatpush3.bf16.msra.mxu1 %v1704_v1  ;;  %v1609_v13 = vld [vmem:[%s2725_s0 + $0x98] sm:$0xff]   ;;  %v1610_v14 = vld [vmem:[%s2725_s0 + $0xa0] sm:$0xff]  }
   0x8   :  { %39 = vst.msk [vmem:[#allocation2 + $0x70] sm:$0xff] %vm24_vm1, %v1670_v3  ;;  %40 = vst.msk [vmem:[#allocation2 + $0x78] sm:$0xff] %vm24_vm1, %v1670_v3  ;;  %v1597_v15 = vld [vmem:[%s2725_s0 + $0x38] sm:$0xff]   ;;  %v1598_v16 = vld [vmem:[%s2725_s0 + $0x40] sm:$0xff]  }
   0x9   :  { %41 = vst.msk [vmem:[#allocation2 + $0x80] sm:$0xff] %vm24_vm1, %v1670_v3  ;;  %42 = vst.msk [vmem:[#allocation2 + $0x88] sm:$0xff] %vm24_vm1, %v1670_v3  ;;  %v1611_v17 = vld [vmem:[%s2725_s0 + $0xa8] sm:$0xff]   ;;  %v1612_v18 = vld [vmem:[%s2725_s0 + $0xb0] sm:$0xff]  }
   0xa   :  { %43 = vst.msk [vmem:[#allocation2 + $0x90] sm:$0xff] %vm24_vm1, %v1670_v3  ;;  %44 = vst.msk [vmem:[#allocation2 + $0x98] sm:$0xff] %vm24_vm1, %v1670_v3  ;;  %1518 = vmatmul.mubr.msk.bf16.vlgmr.msra.gmra.mrb[0].mxu0 %vm393_vm0, %v1591_v4  ;;  %1550 = vmatmul.mubr.msk.bf16.vlgmr.msra.gmra.mrb[0].mxu1 %vm393_vm0, %v1607_v9 }
   0xb   :  { %45 = vst.msk [vmem:[#allocation2 + $0xa0] sm:$0xff] %vm24_vm1, %v1670_v3  ;;  %46 = vst.msk [vmem:[#allocation2 + $0xa8] sm:$0xff] %vm24_vm1, %v1670_v3  ;;  %1521 = vmatprep.mubr.msk.bf16.mxu0 %vm393_vm0, %v1592_v5  ;;  %1553 = vmatprep.mubr.msk.bf16.mxu1 %vm393_vm0, %v1608_v10 }
   0xc   :  { %47 = vst.msk [vmem:[#allocation2 + $0xb0] sm:$0xff] %vm24_vm1, %v1670_v3  ;;  %48 = vst.msk [vmem:[#allocation2 + $0xb8] sm:$0xff] %vm24_vm1, %v1670_v3 }
   0xd   :  { %49 = vst.msk [vmem:[#allocation2 + $0xc0] sm:$0xff] %vm24_vm1, %v1670_v3  ;;  %50 = vst.msk [vmem:[#allocation2 + $0xc8] sm:$0xff] %vm24_vm1, %v1670_v3 }
   0xe   :  { %51 = vst.msk [vmem:[#allocation2 + $0xd0] sm:$0xff] %vm24_vm1, %v1670_v3  ;;  %52 = vst.msk [vmem:[#allocation2 + $0xd8] sm:$0xff] %vm24_vm1, %v1670_v3 }
   0xf   :  { %53 = vst.msk [vmem:[#allocation2 + $0xe0] sm:$0xff] %vm24_vm1, %v1670_v3  ;;  %54 = vst.msk [vmem:[#allocation2 + $0xe8] sm:$0xff] %vm24_vm1, %v1670_v3 }
  0x10   :  { %55 = vst.msk [vmem:[#allocation2 + $0xf0] sm:$0xff] %vm24_vm1, %v1670_v3  ;;  %56 = vst.msk [vmem:[#allocation2 + $0xf8] sm:$0xff] %vm24_vm1, %v1670_v3 }
  0x11   :  { %57 = vst.msk [vmem:[#allocation2 + $0x100] sm:$0xff] %vm24_vm1, %v1670_v3  ;;  %58 = vst.msk [vmem:[#allocation2 + $0x108] sm:$0xff] %vm24_vm1, %v1670_v3 }
  0x12   :  { %59 = vst.msk [vmem:[#allocation2 + $0x110] sm:$0xff] %vm24_vm1, %v1670_v3  ;;  %60 = vst.msk [vmem:[#allocation2 + $0x118] sm:$0xff] %vm24_vm1, %v1670_v3  ;;  %1522 = vmatmul.mubr.msk.bf16.gmra.mrb[4].mxu0 %vm393_vm0, %v1593_v6  ;;  %1554 = vmatmul.mubr.msk.bf16.gmra.mrb[4].mxu1 %vm393_vm0, %v1609_v13 }
  0x13   :  { %61 = vst.msk [vmem:[#allocation2 + $0x120] sm:$0xff] %vm24_vm1, %v1670_v3  ;;  %62 = vst.msk [vmem:[#allocation2 + $0x128] sm:$0xff] %vm24_vm1, %v1670_v3  ;;  %1525 = vmatprep.mubr.msk.bf16.mxu0 %vm393_vm0, %v1594_v7  ;;  %1557 = vmatprep.mubr.msk.bf16.mxu1 %vm393_vm0, %v1610_v14 }
  0x14   :  { %63 = vst.msk [vmem:[#allocation2 + $0x130] sm:$0xff] %vm24_vm1, %v1670_v3  ;;  %64 = vst.msk [vmem:[#allocation2 + $0x138] sm:$0xff] %vm24_vm1, %v1670_v3 }
  0x15   :  { %65 = vst.msk [vmem:[#allocation2 + $0x140] sm:$0xff] %vm24_vm1, %v1670_v3  ;;  %66 = vst.msk [vmem:[#allocation2 + $0x148] sm:$0xff] %vm24_vm1, %v1670_v3 }
  0x16   :  { %67 = vst.msk [vmem:[#allocation2 + $0x150] sm:$0xff] %vm24_vm1, %v1670_v3  ;;  %68 = vst.msk [vmem:[#allocation2 + $0x158] sm:$0xff] %vm24_vm1, %v1670_v3 }
  0x17   :  { %69 = vst.msk [vmem:[#allocation2 + $0x160] sm:$0xff] %vm24_vm1, %v1670_v3  ;;  %70 = vst.msk [vmem:[#allocation2 + $0x168] sm:$0xff] %vm24_vm1, %v1670_v3 }
  0x18   :  { %71 = vst.msk [vmem:[#allocation2 + $0x170] sm:$0xff] %vm24_vm1, %v1670_v3  ;;  %72 = vst.msk [vmem:[#allocation2 + $0x178] sm:$0xff] %vm24_vm1, %v1670_v3 }
  0x19   :  { %73 = vst.msk [vmem:[#allocation2 + $0x180] sm:$0xff] %vm24_vm1, %v1670_v3  ;;  %74 = vst.msk [vmem:[#allocation2 + $0x188] sm:$0xff] %vm24_vm1, %v1670_v3 }
  0x1a   :  { %75 = vst.msk [vmem:[#allocation2 + $0x190] sm:$0xff] %vm24_vm1, %v1670_v3  ;;  %76 = vst.msk [vmem:[#allocation2 + $0x198] sm:$0xff] %vm24_vm1, %v1670_v3  ;;  %1526 = vmatmul.mubr.msk.bf16.gmra.mrb[8].mxu0 %vm393_vm0, %v1595_v11 }
  0x1b   :  { %77 = vst.msk [vmem:[#allocation2 + $0x1a0] sm:$0xff] %vm24_vm1, %v1670_v3  ;;  %78 = vst.msk [vmem:[#allocation2 + $0x1a8] sm:$0xff] %vm24_vm1, %v1670_v3  ;;  %1529 = vmatprep.mubr.msk.bf16.mxu0 %vm393_vm0, %v1596_v12 }
  0x1c   :  { %79 = vst.msk [vmem:[#allocation2 + $0x1b0] sm:$0xff] %vm24_vm1, %v1670_v3  ;;  %80 = vst.msk [vmem:[#allocation2 + $0x1b8] sm:$0xff] %vm24_vm1, %v1670_v3 }
  0x1d   :  { %81 = vst.msk [vmem:[#allocation2 + $0x1c0] sm:$0xff] %vm24_vm1, %v1670_v3  ;;  %82 = vst.msk [vmem:[#allocation2 + $0x1c8] sm:$0xff] %vm24_vm1, %v1670_v3 }
  0x1e   :  { %83 = vst.msk [vmem:[#allocation2 + $0x1d0] sm:$0xff] %vm24_vm1, %v1670_v3  ;;  %84 = vst.msk [vmem:[#allocation2 + $0x1d8] sm:$0xff] %vm24_vm1, %v1670_v3 }
  0x1f   :  { %85 = vst.msk [vmem:[#allocation2 + $0x1e0] sm:$0xff] %vm24_vm1, %v1670_v3  ;;  %86 = vst.msk [vmem:[#allocation2 + $0x1e8] sm:$0xff] %vm24_vm1, %v1670_v3 }
  0x20   :  { %87 = vst.msk [vmem:[#allocation2 + $0x1f0] sm:$0xff] %vm24_vm1, %v1670_v3  ;;  %88 = vst.msk [vmem:[#allocation2 + $0x1f8] sm:$0xff] %vm24_vm1, %v1670_v3 }
  0x22   :  { %1530 = vmatmul.mubr.msk.bf16.gmra.mrb[12].mxu0 %vm393_vm0, %v1597_v15 }
  0x23   :  { %11 = vsyncpa [#allocation6], 0  ;;  %1533 = vmatprep.mubr.msk.bf16.mxu0 %vm393_vm0, %v1598_v16  ;;  %1558 = vmatmul.mubr.msk.bf16.gmra.mrb[8].mxu1 %vm393_vm0, %v1611_v17  ;;  %v1599_v19 = vld [vmem:[%s2725_s0 + $0x48] sm:$0xff]   ;;  %v1600_v20 = vld [vmem:[%s2725_s0 + $0x50] sm:$0xff]   ;;  %vm910_vm2 = vcmask 516096   ;;  %s1672_s18 = smov [#allocation5]  }
  0x24   :  { %1561 = vmatprep.mubr.msk.bf16.mxu1 %vm393_vm0, %v1612_v18  ;;  %v1613_v21 = vld [vmem:[%s2725_s0 + $0xb8] sm:$0xff]   ;;  %v1614_v22 = vld [vmem:[%s2725_s0 + $0xc0] sm:$0xff]   ;;  %v1615_v25 = vld [vmem:[%s2725_s0 + $0xc8] sm:$0xff]   ;;  %911 = vst.msk [vmem:[#allocation3] sm:$0x1] %vm910_vm2, %v1670_v3  ;;  %s1399_s19 = sshll.u32 %s1672_s18, 4  ;;  %s2692_s19 = int_to_ptr.vmem [resolvable:$true] %s1399_s19 }
  0x25   :  { %v1601_v23 = vld [vmem:[%s2725_s0 + $0x58] sm:$0xff]   ;;  %v1602_v24 = vld [vmem:[%s2725_s0 + $0x60] sm:$0xff]   ;;  %v1616_v26 = vld [vmem:[%s2725_s0 + $0xd0] sm:$0xff]   ;;  %912 = vst.msk [vmem:[#allocation5] sm:$0x1] %vm910_vm2, %v1670_v3 }
  0x26   :  { %v1603_v27 = vld [vmem:[%s2725_s0 + $0x68] sm:$0xff]   ;;  %v1604_v28 = vld [vmem:[%s2725_s0 + $0x70] sm:$0xff]   ;;  %v1617_v29 = vld [vmem:[%s2725_s0 + $0xd8] sm:$0xff]  }
  0x27   :  { %v1618_v30 = vld [vmem:[%s2725_s0 + $0xe0] sm:$0xff]   ;;  %v1605_v31 = vld [vmem:[%s2725_s0 + $0x78] sm:$0xff]   ;;  %v1619_v32 = vld [vmem:[%s2725_s0 + $0xe8] sm:$0xff]  }
  0x28   :  { %v1620_v33 = vld [vmem:[%s2725_s0 + $0xf0] sm:$0xff]   ;;  %v1621_v34 = vld [vmem:[%s2725_s0 + $0xf8] sm:$0xff]   ;;  %v89_v36 = vld [vmem:[#allocation2] sm:$0xff] }
  0x29   :  { %v91_v35 = vld [vmem:[#allocation2 + $0x10] sm:$0xff]  ;;  %v92_v38 = vld [vmem:[#allocation2 + $0x18] sm:$0xff]  ;;  %v90_v41 = vld [vmem:[#allocation2 + $0x8] sm:$0xff] }
  0x2a   :  { %1534 = vmatmul.mubr.msk.bf16.gmra.mrb[16].mxu0 %vm393_vm0, %v1599_v19  ;;  %v95_v47 = vld [vmem:[#allocation2 + $0x30] sm:$0xff]  ;;  %v93_v48 = vld [vmem:[#allocation2 + $0x20] sm:$0xff]  ;;  %v96_v50 = vld [vmem:[#allocation2 + $0x38] sm:$0xff] }
  0x2b   :  { %1537 = vmatprep.mubr.msk.bf16.mxu0 %vm393_vm0, %v1600_v20  ;;  %1562 = vmatmul.mubr.msk.bf16.gmra.mrb[12].mxu1 %vm393_vm0, %v1613_v21  ;;  %v94_v53 = vld [vmem:[#allocation2 + $0x28] sm:$0xff]  ;;  %v123_v54 = vld [vmem:[#allocation2 + $0x110] sm:$0xff]  ;;  %v121_v58 = vld [vmem:[#allocation2 + $0x100] sm:$0xff] }
  0x2c   :  { %1565 = vmatprep.mubr.msk.bf16.mxu1 %vm393_vm0, %v1614_v22  ;;  %v124_v63 = vld [vmem:[#allocation2 + $0x118] sm:$0xff]  ;;  %v122_v5 = vld [vmem:[#allocation2 + $0x108] sm:$0xff]  ;;  %v99_v13 = vld [vmem:[#allocation2 + $0x50] sm:$0xff] }
  0x2d   :  { %v97_v18 = vld [vmem:[#allocation2 + $0x40] sm:$0xff] }
  0x32   :  { %1538 = vmatmul.mubr.msk.bf16.gmra.mrb[20].mxu0 %vm393_vm0, %v1601_v23 }
  0x33   :  { %1541 = vmatprep.mubr.msk.bf16.mxu0 %vm393_vm0, %v1602_v24  ;;  %1566 = vmatmul.mubr.msk.bf16.gmra.mrb[16].mxu1 %vm393_vm0, %v1615_v25 }
  0x34   :  { %1569 = vmatprep.mubr.msk.bf16.mxu1 %vm393_vm0, %v1616_v26 }
  0x3a   :  { %1542 = vmatmul.mubr.msk.bf16.gmra.mrb[24].mxu0 %vm393_vm0, %v1603_v27 }
  0x3b   :  { %1545 = vmatprep.mubr.msk.bf16.mxu0 %vm393_vm0, %v1604_v28  ;;  %1570 = vmatmul.mubr.msk.bf16.gmra.mrb[20].mxu1 %vm393_vm0, %v1617_v29  ;;  %v100_v28 = vld [vmem:[#allocation2 + $0x58] sm:$0xff]  ;;  %v98_v29 = vld [vmem:[#allocation2 + $0x48] sm:$0xff] }
  0x3c   :  { %1573 = vmatprep.mubr.msk.bf16.mxu1 %vm393_vm0, %v1618_v30 }
  0x42   :  { %1546 = vmatmul.mubr.msk.bf16.gmra.mrb[28].mxu0 %vm393_vm0, %v1605_v31 }
  0x43   :  { %1574 = vmatmul.mubr.msk.bf16.gmra.mrb[24].mxu1 %vm393_vm0, %v1619_v32 }
  0x44   :  { %1577 = vmatprep.mubr.msk.bf16.mxu1 %vm393_vm0, %v1620_v33 }
  0x4b   :  { %1578 = vmatmul.mubr.msk.bf16.gmra.mrb[28].mxu1 %vm393_vm0, %v1621_v34 }
  0xdd   :  { %v1519_v37 = vpop.f32.mrb[0].mxu0  ;;  %v1551_v62 = vpop.f32.mrb[0].mxu1 }
  0xde   :  { %v781_v39 = vadd.f32 %v1519_v37, %v91_v35  ;;  %v524_v40 = vpop.f32.mrb[1].mxu0  ;;  %v813_v3 = vadd.f32 %v1551_v62, %v123_v54  ;;  %v652_v4 = vpop.f32.mrb[1].mxu1  ;;  %v101_v62 = vld [vmem:[#allocation2 + $0x60] sm:$0xff] }
  0xdf   :  { %v779_v42 = vadd.f32 %v524_v40, %v89_v36  ;;  %v1520_v43 = vpop.f32.mrb[2].mxu0  ;;  %v811_v8 = vadd.f32 %v652_v4, %v121_v58  ;;  %v1552_v9 = vpop.f32.mrb[2].mxu1 }
  0xe0   :  { %846 = vst.msk [vmem:[#allocation2 + $0x10] sm:$0xff] %vm24_vm1, %v781_v39  ;;  %v782_v44 = vadd.f32 %v1520_v43, %v92_v38  ;;  %v527_v45 = vpop.f32.mrb[3].mxu0  ;;  %878 = vst.msk [vmem:[#allocation2 + $0x110] sm:$0xff] %vm24_vm1, %v813_v3  ;;  %v814_v14 = vadd.f32 %v1552_v9, %v124_v63  ;;  %v655_v15 = vpop.f32.mrb[3].mxu1  ;;  %v102_v9 = vld [vmem:[#allocation2 + $0x68] sm:$0xff] }
  0xe1   :  { %844 = vst.msk [vmem:[#allocation2] sm:$0xff] %vm24_vm1, %v779_v42  ;;  %v780_v46 = vadd.f32 %v527_v45, %v90_v41  ;;  %876 = vst.msk [vmem:[#allocation2 + $0x100] sm:$0xff] %vm24_vm1, %v811_v8  ;;  %v812_v19 = vadd.f32 %v655_v15, %v122_v5  ;;  %v104_v8 = vld [vmem:[#allocation2 + $0x78] sm:$0xff] }
  0xe2   :  { %847 = vst.msk [vmem:[#allocation2 + $0x18] sm:$0xff] %vm24_vm1, %v782_v44  ;;  %879 = vst.msk [vmem:[#allocation2 + $0x118] sm:$0xff] %vm24_vm1, %v814_v14 }
  0xe3   :  { %845 = vst.msk [vmem:[#allocation2 + $0x8] sm:$0xff] %vm24_vm1, %v780_v46  ;;  %877 = vst.msk [vmem:[#allocation2 + $0x108] sm:$0xff] %vm24_vm1, %v812_v19 }
  0xe5   :  { %v1523_v49 = vpop.f32.mrb[4].mxu0  ;;  %v2014_v40 = vpop.f32.mrb[4].mxu1 }
  0xe6   :  { %v785_v51 = vadd.f32 %v1523_v49, %v95_v47  ;;  %v540_v52 = vpop.f32.mrb[5].mxu0  ;;  %v2022_v46 = vpop.f32.mrb[5].mxu1 }
  0xe7   :  { %v918_v55 = vld [vmem:[#allocation2 + $0x10] sm:$0xff]  ;;  %v783_v56 = vadd.f32 %v540_v52, %v93_v48  ;;  %v1524_v57 = vpop.f32.mrb[6].mxu0 }
  0xe8   :  { %982 = vst.msk [vmem:[%s2727_s2 + $0x10] sm:$0xff] %vm24_vm1, %v918_v55  ;;  %v916_v59 = vld [vmem:[#allocation2] sm:$0xff]  ;;  %850 = vst.msk [vmem:[#allocation2 + $0x30] sm:$0xff] %vm24_vm1, %v785_v51  ;;  %v786_v60 = vadd.f32 %v1524_v57, %v96_v50  ;;  %v543_v61 = vpop.f32.mrb[7].mxu0  ;;  %v1184_v6 = vmul.f32 %v918_v55, %v918_v55  ;;  %v1048_v20 = vsel %vm24_vm1, %v918_v55, 0.0  ;;  %v2028_v50 = vld [vmem:[#allocation2 + $0x110] sm:$0xff] }
  0xe9   :  { %980 = vst.msk [vmem:[%s2727_s2] sm:$0xff] %vm24_vm1, %v916_v59  ;;  %v1182_v0 = vmul.f32 %v916_v59, %v916_v59  ;;  %v919_v1 = vld [vmem:[#allocation2 + $0x18] sm:$0xff]  ;;  %848 = vst.msk [vmem:[#allocation2 + $0x20] sm:$0xff] %vm24_vm1, %v783_v56  ;;  %v784_v2 = vadd.f32 %v543_v61, %v94_v53  ;;  %v1045_v10 = vsel %vm24_vm1, %v916_v59, 0.0  ;;  %v2030_v51 = vpop.f32.mrb[6].mxu1  ;;  %v103_v56 = vld [vmem:[#allocation2 + $0x70] sm:$0xff] }
  0xea   :  { %983 = vst.msk [vmem:[%s2727_s2 + $0x18] sm:$0xff] %vm24_vm1, %v919_v1  ;;  %v917_v7 = vld [vmem:[#allocation2 + $0x8] sm:$0xff]  ;;  %851 = vst.msk [vmem:[#allocation2 + $0x38] sm:$0xff] %vm24_vm1, %v786_v60  ;;  %v1185_v16 = vmul.f32 %v919_v1, %v919_v1  ;;  %v1249_v30 = vsel %vm24_vm1, %v1184_v6, 0.0  ;;  %v1050_v31 = vsel %vm24_vm1, %v919_v1, 0.0  ;;  %v2045_v57 = vld [vmem:[#allocation2 + $0x100] sm:$0xff] }
  0xeb   :  { %981 = vst.msk [vmem:[%s2727_s2 + $0x8] sm:$0xff] %vm24_vm1, %v917_v7  ;;  %v1046_v11 = vsel %vm24_vm1, %v917_v7, 0.0  ;;  %v1183_v12 = vmul.f32 %v917_v7, %v917_v7  ;;  %849 = vst.msk [vmem:[#allocation2 + $0x28] sm:$0xff] %vm24_vm1, %v784_v2  ;;  %v1246_v21 = vsel %vm24_vm1, %v1182_v0, 0.0  ;;  %v2047_v58 = vpop.f32.mrb[7].mxu1  ;;  %v2054_v63 = vld [vmem:[#allocation2 + $0x118] sm:$0xff] }
  0xec   :  { %v1047_v17 = vadd.f32 %v1046_v11, %v1045_v10  ;;  %v1251_v35 = vsel %vm24_vm1, %v1185_v16, 0.0  ;;  %1014 = vst.msk [vmem:[%s2727_s2 + $0x110] sm:$0xff] %vm24_vm1, %v2028_v50  ;;  %1012 = vst.msk [vmem:[%s2727_s2 + $0x100] sm:$0xff] %vm24_vm1, %v2045_v57  ;;  %v2063_v3 = vld [vmem:[#allocation2 + $0x108] sm:$0xff] }
  0xed   :  { %v1247_v22 = vsel %vm24_vm1, %v1183_v12, 0.0  ;;  %v1527_v23 = vpop.f32.mrb[8].mxu0  ;;  %1015 = vst.msk [vmem:[%s2727_s2 + $0x118] sm:$0xff] %vm24_vm1, %v2054_v63  ;;  %1013 = vst.msk [vmem:[%s2727_s2 + $0x108] sm:$0xff] %vm24_vm1, %v2063_v3 }
  0xee   :  { %v1049_v24 = vadd.f32 %v1048_v20, %v1047_v17  ;;  %v1248_v25 = vadd.f32 %v1247_v22, %v1246_v21  ;;  %v789_v26 = vadd.f32 %v1527_v23, %v99_v13  ;;  %v556_v27 = vpop.f32.mrb[9].mxu0 }
  0xef   :  { %v922_v32 = vld [vmem:[#allocation2 + $0x30] sm:$0xff]  ;;  %v787_v33 = vadd.f32 %v556_v27, %v97_v18  ;;  %v1528_v34 = vpop.f32.mrb[10].mxu0 }
  0xf0   :  { %v1250_v36 = vadd.f32 %v1249_v30, %v1248_v25  ;;  %986 = vst.msk [vmem:[%s2727_s2 + $0x30] sm:$0xff] %vm24_vm1, %v922_v32  ;;  %v920_v37 = vld [vmem:[#allocation2 + $0x20] sm:$0xff]  ;;  %v1051_v38 = vadd.f32 %v1050_v31, %v1049_v24  ;;  %854 = vst.msk [vmem:[#allocation2 + $0x50] sm:$0xff] %vm24_vm1, %v789_v26  ;;  %v559_v39 = vpop.f32.mrb[11].mxu0  ;;  %v790_v44 = vadd.f32 %v1528_v34, %v100_v28  ;;  %v1056_v0 = vsel %vm24_vm1, %v922_v32, 0.0  ;;  %v127_v25 = vld [vmem:[#allocation2 + $0x130] sm:$0xff] }
  0xf1   :  { %984 = vst.msk [vmem:[%s2727_s2 + $0x20] sm:$0xff] %vm24_vm1, %v920_v37  ;;  %v1052_v41 = vsel %vm24_vm1, %v920_v37, 0.0  ;;  %v1186_v42 = vmul.f32 %v920_v37, %v920_v37  ;;  %v923_v43 = vld [vmem:[#allocation2 + $0x38] sm:$0xff]  ;;  %852 = vst.msk [vmem:[#allocation2 + $0x40] sm:$0xff] %vm24_vm1, %v787_v33  ;;  %v788_v45 = vadd.f32 %v559_v39, %v98_v29  ;;  %v1188_v52 = vmul.f32 %v922_v32, %v922_v32  ;;  %v125_v31 = vld [vmem:[#allocation2 + $0x120] sm:$0xff] }
  0xf2   :  { %v1053_v47 = vadd.f32 %v1052_v41, %v1051_v38  ;;  %v1252_v48 = vadd.f32 %v1251_v35, %v1250_v36  ;;  %987 = vst.msk [vmem:[%s2727_s2 + $0x38] sm:$0xff] %vm24_vm1, %v923_v43  ;;  %v921_v49 = vld [vmem:[#allocation2 + $0x28] sm:$0xff]  ;;  %855 = vst.msk [vmem:[#allocation2 + $0x58] sm:$0xff] %vm24_vm1, %v790_v44  ;;  %v1189_v60 = vmul.f32 %v923_v43, %v923_v43  ;;  %v1058_v11 = vsel %vm24_vm1, %v923_v43, 0.0  ;;  %v107_v35 = vld [vmem:[#allocation2 + $0x90] sm:$0xff] }
  0xf3   :  { %v1253_v53 = vsel %vm24_vm1, %v1186_v42, 0.0  ;;  %985 = vst.msk [vmem:[%s2727_s2 + $0x28] sm:$0xff] %vm24_vm1, %v921_v49  ;;  %v1054_v54 = vsel %vm24_vm1, %v921_v49, 0.0  ;;  %v1187_v55 = vmul.f32 %v921_v49, %v921_v49  ;;  %853 = vst.msk [vmem:[#allocation2 + $0x48] sm:$0xff] %vm24_vm1, %v788_v45  ;;  %v1257_v10 = vsel %vm24_vm1, %v1188_v52, 0.0  ;;  %v128_v36 = vld [vmem:[#allocation2 + $0x138] sm:$0xff] }
  0xf4   :  { %v1254_v59 = vadd.f32 %v1253_v53, %v1252_v48  ;;  %v1055_v61 = vadd.f32 %v1054_v54, %v1053_v47  ;;  %v1259_v15 = vsel %vm24_vm1, %v1189_v60, 0.0  ;;  %v105_v43 = vld [vmem:[#allocation2 + $0x80] sm:$0xff]  ;;  %v126_v44 = vld [vmem:[#allocation2 + $0x128] sm:$0xff]  ;;  %v108_v49 = vld [vmem:[#allocation2 + $0x98] sm:$0xff]  ;;  %v817_v52 = vadd.f32 %v2014_v40, %v127_v25 }
  0xf5   :  { %v1255_v1 = vsel %vm24_vm1, %v1187_v55, 0.0  ;;  %v1531_v2 = vpop.f32.mrb[12].mxu0  ;;  %v815_v53 = vadd.f32 %v2022_v46, %v125_v31  ;;  %v106_v60 = vld [vmem:[#allocation2 + $0x88] sm:$0xff]  ;;  %v816_v40 = vadd.f32 %v2047_v58, %v126_v44  ;;  %v131_v46 = vld [vmem:[#allocation2 + $0x150] sm:$0xff]  ;;  %v136_v31 = vld [vmem:[#allocation2 + $0x178] sm:$0xff] }
  0xf6   :  { %v1057_v4 = vadd.f32 %v1056_v0, %v1055_v61  ;;  %v1256_v5 = vadd.f32 %v1255_v1, %v1254_v59  ;;  %v793_v6 = vadd.f32 %v1531_v2, %v103_v56  ;;  %v572_v7 = vpop.f32.mrb[13].mxu0  ;;  %v2078_v20 = vpop.f32.mrb[8].mxu1  ;;  %v818_v61 = vadd.f32 %v2030_v51, %v128_v36  ;;  %882 = vst.msk [vmem:[#allocation2 + $0x130] sm:$0xff] %vm24_vm1, %v817_v52  ;;  %v109_v36 = vld [vmem:[#allocation2 + $0xa0] sm:$0xff] }
  0xf7   :  { %v926_v12 = vld [vmem:[#allocation2 + $0x50] sm:$0xff]  ;;  %v791_v13 = vadd.f32 %v572_v7, %v101_v62  ;;  %v1532_v14 = vpop.f32.mrb[14].mxu0  ;;  %v2086_v26 = vpop.f32.mrb[9].mxu1  ;;  %880 = vst.msk [vmem:[#allocation2 + $0x120] sm:$0xff] %vm24_vm1, %v815_v53  ;;  %881 = vst.msk [vmem:[#allocation2 + $0x128] sm:$0xff] %vm24_vm1, %v816_v40 }
  0xf8   :  { %v1258_v16 = vadd.f32 %v1257_v10, %v1256_v5  ;;  %990 = vst.msk [vmem:[%s2727_s2 + $0x50] sm:$0xff] %vm24_vm1, %v926_v12  ;;  %v924_v17 = vld [vmem:[#allocation2 + $0x40] sm:$0xff]  ;;  %v1059_v18 = vadd.f32 %v1058_v11, %v1057_v4  ;;  %858 = vst.msk [vmem:[#allocation2 + $0x70] sm:$0xff] %vm24_vm1, %v793_v6  ;;  %v575_v19 = vpop.f32.mrb[15].mxu0  ;;  %v794_v23 = vadd.f32 %v1532_v14, %v104_v8  ;;  %v2088_v32 = vpop.f32.mrb[10].mxu1  ;;  %v1064_v45 = vsel %vm24_vm1, %v926_v12, 0.0 }
  0xf9   :  { %988 = vst.msk [vmem:[%s2727_s2 + $0x40] sm:$0xff] %vm24_vm1, %v924_v17  ;;  %v1060_v21 = vsel %vm24_vm1, %v924_v17, 0.0  ;;  %v1190_v22 = vmul.f32 %v924_v17, %v924_v17  ;;  %856 = vst.msk [vmem:[#allocation2 + $0x60] sm:$0xff] %vm24_vm1, %v791_v13  ;;  %v792_v24 = vadd.f32 %v575_v19, %v102_v9  ;;  %v927_v29 = vld [vmem:[#allocation2 + $0x58] sm:$0xff]  ;;  %v2102_v37 = vpop.f32.mrb[11].mxu1  ;;  %v1192_v38 = vmul.f32 %v926_v12, %v926_v12  ;;  %v129_v5 = vld [vmem:[#allocation2 + $0x140] sm:$0xff] }
  0xfa   :  { %v1061_v27 = vadd.f32 %v1060_v21, %v1059_v18  ;;  %v1260_v28 = vadd.f32 %v1259_v15, %v1258_v16  ;;  %v925_v30 = vld [vmem:[#allocation2 + $0x48] sm:$0xff]  ;;  %991 = vst.msk [vmem:[%s2727_s2 + $0x58] sm:$0xff] %vm24_vm1, %v927_v29  ;;  %859 = vst.msk [vmem:[#allocation2 + $0x78] sm:$0xff] %vm24_vm1, %v794_v23  ;;  %v1193_v47 = vmul.f32 %v927_v29, %v927_v29  ;;  %v1066_v62 = vsel %vm24_vm1, %v927_v29, 0.0  ;;  %v132_v14 = vld [vmem:[#allocation2 + $0x158] sm:$0xff] }
  0xfb   :  { %v1261_v33 = vsel %vm24_vm1, %v1190_v22, 0.0  ;;  %989 = vst.msk [vmem:[%s2727_s2 + $0x48] sm:$0xff] %vm24_vm1, %v925_v30  ;;  %v1062_v34 = vsel %vm24_vm1, %v925_v30, 0.0  ;;  %857 = vst.msk [vmem:[#allocation2 + $0x68] sm:$0xff] %vm24_vm1, %v792_v24  ;;  %v1191_v42 = vmul.f32 %v925_v30, %v925_v30  ;;  %v1265_v6 = vsel %vm24_vm1, %v1192_v38, 0.0  ;;  %v130_v15 = vld [vmem:[#allocation2 + $0x148] sm:$0xff] }
  0xfc   :  { %v1262_v39 = vadd.f32 %v1261_v33, %v1260_v28  ;;  %v1063_v41 = vadd.f32 %v1062_v34, %v1061_v27  ;;  %883 = vst.msk [vmem:[#allocation2 + $0x138] sm:$0xff] %vm24_vm1, %v818_v61  ;;  %v1267_v17 = vsel %vm24_vm1, %v1193_v47, 0.0  ;;  %v821_v22 = vadd.f32 %v2078_v20, %v131_v46  ;;  %v135_v24 = vld [vmem:[#allocation2 + $0x170] sm:$0xff] }
  0xfd   :  { %v1535_v48 = vpop.f32.mrb[16].mxu0  ;;  %v1263_v55 = vsel %vm24_vm1, %v1191_v42, 0.0  ;;  %v819_v23 = vadd.f32 %v2086_v26, %v129_v5  ;;  %v111_v20 = vld [vmem:[#allocation2 + $0xb0] sm:$0xff]  ;;  %v133_v26 = vld [vmem:[#allocation2 + $0x160] sm:$0xff]  ;;  %v822_v38 = vadd.f32 %v2088_v32, %v132_v14 }
  0xfe   :  { %v1065_v54 = vadd.f32 %v1064_v45, %v1063_v41  ;;  %v797_v56 = vadd.f32 %v1535_v48, %v107_v35  ;;  %v588_v59 = vpop.f32.mrb[17].mxu0  ;;  %v1264_v0 = vadd.f32 %v1263_v55, %v1262_v39  ;;  %v1563_v10 = vpop.f32.mrb[12].mxu1  ;;  %886 = vst.msk [vmem:[#allocation2 + $0x150] sm:$0xff] %vm24_vm1, %v821_v22  ;;  %v820_v39 = vadd.f32 %v2102_v37, %v130_v15  ;;  %v112_v45 = vld [vmem:[#allocation2 + $0xb8] sm:$0xff]  ;;  %v2150_v53 = vld [vmem:[#allocation2 + $0x130] sm:$0xff]  ;;  %v2181_v5 = vld [vmem:[#allocation2 + $0x128] sm:$0xff] }
  0xff   :  { %v930_v1 = vld [vmem:[#allocation2 + $0x70] sm:$0xff]  ;;  %v795_v2 = vadd.f32 %v588_v59, %v105_v43  ;;  %v1536_v4 = vpop.f32.mrb[18].mxu0  ;;  %v700_v16 = vpop.f32.mrb[13].mxu1  ;;  %884 = vst.msk [vmem:[#allocation2 + $0x140] sm:$0xff] %vm24_vm1, %v819_v23  ;;  %v825_v47 = vadd.f32 %v1563_v10, %v135_v24  ;;  %887 = vst.msk [vmem:[#allocation2 + $0x158] sm:$0xff] %vm24_vm1, %v822_v38 }
 0x100   :  { %994 = vst.msk [vmem:[%s2727_s2 + $0x70] sm:$0xff] %vm24_vm1, %v930_v1  ;;  %v928_v51 = vld [vmem:[#allocation2 + $0x60] sm:$0xff]  ;;  %v1067_v7 = vadd.f32 %v1066_v62, %v1065_v54  ;;  %862 = vst.msk [vmem:[#allocation2 + $0x90] sm:$0xff] %vm24_vm1, %v797_v56  ;;  %v798_v8 = vadd.f32 %v1536_v4, %v108_v49  ;;  %v591_v9 = vpop.f32.mrb[19].mxu0  ;;  %v1266_v11 = vadd.f32 %v1265_v6, %v1264_v0  ;;  %v1564_v25 = vpop.f32.mrb[14].mxu1  ;;  %v1072_v27 = vsel %vm24_vm1, %v930_v1, 0.0 }
 0x101   :  { %992 = vst.msk [vmem:[%s2727_s2 + $0x60] sm:$0xff] %vm24_vm1, %v928_v51  ;;  %v1068_v58 = vsel %vm24_vm1, %v928_v51, 0.0  ;;  %v1194_v12 = vmul.f32 %v928_v51, %v928_v51  ;;  %860 = vst.msk [vmem:[#allocation2 + $0x80] sm:$0xff] %vm24_vm1, %v795_v2  ;;  %v796_v13 = vadd.f32 %v591_v9, %v106_v60  ;;  %v931_v19 = vld [vmem:[#allocation2 + $0x78] sm:$0xff]  ;;  %v1196_v28 = vmul.f32 %v930_v1, %v930_v1  ;;  %v2142_v33 = vpop.f32.mrb[15].mxu1  ;;  %v2152_v54 = vld [vmem:[#allocation2 + $0x120] sm:$0xff] }
 0x102   :  { %v1069_v18 = vadd.f32 %v1068_v58, %v1067_v7  ;;  %v929_v21 = vld [vmem:[#allocation2 + $0x68] sm:$0xff]  ;;  %863 = vst.msk [vmem:[#allocation2 + $0x98] sm:$0xff] %vm24_vm1, %v798_v8  ;;  %v1268_v29 = vadd.f32 %v1267_v17, %v1266_v11  ;;  %995 = vst.msk [vmem:[%s2727_s2 + $0x78] sm:$0xff] %vm24_vm1, %v931_v19  ;;  %v1197_v42 = vmul.f32 %v931_v19, %v931_v19  ;;  %v1074_v2 = vsel %vm24_vm1, %v931_v19, 0.0  ;;  %v115_v19 = vld [vmem:[#allocation2 + $0xd0] sm:$0xff] }
 0x103   :  { %v1269_v30 = vsel %vm24_vm1, %v1194_v12, 0.0  ;;  %993 = vst.msk [vmem:[%s2727_s2 + $0x68] sm:$0xff] %vm24_vm1, %v929_v21  ;;  %861 = vst.msk [vmem:[#allocation2 + $0x88] sm:$0xff] %vm24_vm1, %v796_v13  ;;  %v1070_v34 = vsel %vm24_vm1, %v929_v21, 0.0  ;;  %v1195_v35 = vmul.f32 %v929_v21, %v929_v21  ;;  %v823_v32 = vadd.f32 %v700_v16, %v133_v26  ;;  %v110_v62 = vld [vmem:[#allocation2 + $0xa8] sm:$0xff]  ;;  %v2166_v0 = vld [vmem:[#allocation2 + $0x138] sm:$0xff] }
 0x104   :  { %v1270_v41 = vadd.f32 %v1269_v30, %v1268_v29  ;;  %v1071_v43 = vadd.f32 %v1070_v34, %v1069_v18  ;;  %885 = vst.msk [vmem:[#allocation2 + $0x148] sm:$0xff] %vm24_vm1, %v820_v39  ;;  %v826_v37 = vadd.f32 %v1564_v25, %v136_v31  ;;  %1018 = vst.msk [vmem:[%s2727_s2 + $0x130] sm:$0xff] %vm24_vm1, %v2150_v53  ;;  %v1273_v1 = vsel %vm24_vm1, %v1196_v28, 0.0 }
 0x105   :  { %v1539_v44 = vpop.f32.mrb[20].mxu0  ;;  %v1271_v48 = vsel %vm24_vm1, %v1195_v35, 0.0  ;;  %1016 = vst.msk [vmem:[%s2727_s2 + $0x120] sm:$0xff] %vm24_vm1, %v2152_v54  ;;  %890 = vst.msk [vmem:[#allocation2 + $0x170] sm:$0xff] %vm24_vm1, %v825_v47  ;;  %v1275_v58 = vsel %vm24_vm1, %v1197_v42, 0.0  ;;  %v2214_v21 = vld [vmem:[#allocation2 + $0x150] sm:$0xff] }
 0x106   :  { %v801_v49 = vadd.f32 %v1539_v44, %v111_v20  ;;  %v604_v52 = vpop.f32.mrb[21].mxu0  ;;  %v1073_v55 = vadd.f32 %v1072_v27, %v1071_v43  ;;  %v1272_v56 = vadd.f32 %v1271_v48, %v1270_v41  ;;  %1019 = vst.msk [vmem:[%s2727_s2 + $0x138] sm:$0xff] %vm24_vm1, %v2166_v0  ;;  %888 = vst.msk [vmem:[#allocation2 + $0x160] sm:$0xff] %vm24_vm1, %v823_v32  ;;  %v2185_v6 = vpop.f32.mrb[16].mxu1  ;;  %v2216_v22 = vld [vmem:[#allocation2 + $0x140] sm:$0xff]  ;;  %v116_v20 = vld [vmem:[#allocation2 + $0xd8] sm:$0xff] }
 0x107   :  { %v934_v59 = vld [vmem:[#allocation2 + $0x90] sm:$0xff]  ;;  %v799_v60 = vadd.f32 %v604_v52, %v109_v36  ;;  %v1540_v61 = vpop.f32.mrb[22].mxu0  ;;  %891 = vst.msk [vmem:[#allocation2 + $0x178] sm:$0xff] %vm24_vm1, %v826_v37  ;;  %1017 = vst.msk [vmem:[%s2727_s2 + $0x128] sm:$0xff] %vm24_vm1, %v2181_v5  ;;  %v2198_v11 = vpop.f32.mrb[17].mxu1  ;;  %v113_v27 = vld [vmem:[#allocation2 + $0xc0] sm:$0xff] }
 0x108   :  { %998 = vst.msk [vmem:[%s2727_s2 + $0x90] sm:$0xff] %vm24_vm1, %v934_v59  ;;  %v932_v4 = vld [vmem:[#allocation2 + $0x80] sm:$0xff]  ;;  %866 = vst.msk [vmem:[#allocation2 + $0xb0] sm:$0xff] %vm24_vm1, %v801_v49  ;;  %v802_v40 = vadd.f32 %v1540_v61, %v112_v45  ;;  %v607_v46 = vpop.f32.mrb[23].mxu0  ;;  %v1274_v51 = vadd.f32 %v1273_v1, %v1272_v56  ;;  %v1075_v7 = vadd.f32 %v1074_v2, %v1073_v55  ;;  %v2206_v14 = vpop.f32.mrb[18].mxu1  ;;  %v2231_v26 = vld [vmem:[#allocation2 + $0x158] sm:$0xff] }
 0x109   :  { %996 = vst.msk [vmem:[%s2727_s2 + $0x80] sm:$0xff] %vm24_vm1, %v932_v4  ;;  %v1076_v8 = vsel %vm24_vm1, %v932_v4, 0.0  ;;  %v1198_v9 = vmul.f32 %v932_v4, %v932_v4  ;;  %v935_v10 = vld [vmem:[#allocation2 + $0x98] sm:$0xff]  ;;  %864 = vst.msk [vmem:[#allocation2 + $0xa0] sm:$0xff] %vm24_vm1, %v799_v60  ;;  %v800_v13 = vadd.f32 %v607_v46, %v110_v62  ;;  %v2218_v23 = vpop.f32.mrb[19].mxu1  ;;  %v1200_v24 = vmul.f32 %v934_v59, %v934_v59  ;;  %v114_v41 = vld [vmem:[#allocation2 + $0xc8] sm:$0xff] }
 0x10a   :  { %999 = vst.msk [vmem:[%s2727_s2 + $0x98] sm:$0xff] %vm24_vm1, %v935_v10  ;;  %v933_v12 = vld [vmem:[#allocation2 + $0x88] sm:$0xff]  ;;  %867 = vst.msk [vmem:[#allocation2 + $0xb8] sm:$0xff] %vm24_vm1, %v802_v40  ;;  %v1077_v15 = vadd.f32 %v1076_v8, %v1075_v7  ;;  %v1276_v16 = vadd.f32 %v1275_v58, %v1274_v51  ;;  %v1080_v34 = vsel %vm24_vm1, %v934_v59, 0.0  ;;  %v1201_v35 = vmul.f32 %v935_v10, %v935_v10 }
 0x10b   :  { %v1277_v17 = vsel %vm24_vm1, %v1198_v9, 0.0  ;;  %997 = vst.msk [vmem:[%s2727_s2 + $0x88] sm:$0xff] %vm24_vm1, %v933_v12  ;;  %v1078_v18 = vsel %vm24_vm1, %v933_v12, 0.0  ;;  %v1199_v25 = vmul.f32 %v933_v12, %v933_v12  ;;  %865 = vst.msk [vmem:[#allocation2 + $0xa8] sm:$0xff] %vm24_vm1, %v800_v13  ;;  %v2233_v31 = vld [vmem:[#allocation2 + $0x148] sm:$0xff]  ;;  %v1281_v32 = vsel %vm24_vm1, %v1200_v24, 0.0 }
 0x10c   :  { %1022 = vst.msk [vmem:[%s2727_s2 + $0x150] sm:$0xff] %vm24_vm1, %v2214_v21  ;;  %1020 = vst.msk [vmem:[%s2727_s2 + $0x140] sm:$0xff] %vm24_vm1, %v2216_v22  ;;  %v1278_v28 = vadd.f32 %v1277_v17, %v1276_v16  ;;  %v1079_v29 = vadd.f32 %v1078_v18, %v1077_v15  ;;  %v2247_v42 = vld [vmem:[#allocation2 + $0x170] sm:$0xff]  ;;  %v1082_v37 = vsel %vm24_vm1, %v935_v10, 0.0  ;;  %v1283_v46 = vsel %vm24_vm1, %v1201_v35, 0.0  ;;  %v117_v18 = vld [vmem:[#allocation2 + $0xe0] sm:$0xff] }
 0x10d   :  { %v1543_v30 = vpop.f32.mrb[24].mxu0  ;;  %v1279_v36 = vsel %vm24_vm1, %v1199_v25, 0.0  ;;  %1023 = vst.msk [vmem:[%s2727_s2 + $0x158] sm:$0xff] %vm24_vm1, %v2231_v26  ;;  %1021 = vst.msk [vmem:[%s2727_s2 + $0x148] sm:$0xff] %vm24_vm1, %v2233_v31  ;;  %v2254_v49 = vld [vmem:[#allocation2 + $0x160] sm:$0xff]  ;;  %v119_v12 = vld [vmem:[#allocation2 + $0xf0] sm:$0xff] }
 0x10e   :  { %v805_v38 = vadd.f32 %v1543_v30, %v115_v19  ;;  %v620_v39 = vpop.f32.mrb[25].mxu0  ;;  %v1081_v43 = vadd.f32 %v1080_v34, %v1079_v29  ;;  %v1280_v44 = vadd.f32 %v1279_v36, %v1278_v28  ;;  %1026 = vst.msk [vmem:[%s2727_s2 + $0x170] sm:$0xff] %vm24_vm1, %v2247_v42  ;;  %v2256_v52 = vld [vmem:[#allocation2 + $0x178] sm:$0xff]  ;;  %1024 = vst.msk [vmem:[%s2727_s2 + $0x160] sm:$0xff] %vm24_vm1, %v2254_v49  ;;  %v2275_v60 = vpop.f32.mrb[20].mxu1 }
 0x10f   :  { %v938_v45 = vld [vmem:[#allocation2 + $0xb0] sm:$0xff]  ;;  %v803_v47 = vadd.f32 %v620_v39, %v113_v27  ;;  %v1544_v48 = vpop.f32.mrb[26].mxu0  ;;  %1027 = vst.msk [vmem:[%s2727_s2 + $0x178] sm:$0xff] %vm24_vm1, %v2256_v52  ;;  %v2283_v40 = vpop.f32.mrb[21].mxu1  ;;  %v120_v27 = vld [vmem:[#allocation2 + $0xf8] sm:$0xff] }
 0x110   :  { %1002 = vst.msk [vmem:[%s2727_s2 + $0xb0] sm:$0xff] %vm24_vm1, %v938_v45  ;;  %v936_v55 = vld [vmem:[#allocation2 + $0xa0] sm:$0xff]  ;;  %870 = vst.msk [vmem:[#allocation2 + $0xd0] sm:$0xff] %vm24_vm1, %v805_v38  ;;  %v806_v56 = vadd.f32 %v1544_v48, %v116_v20  ;;  %v623_v59 = vpop.f32.mrb[27].mxu0  ;;  %v1282_v61 = vadd.f32 %v1281_v32, %v1280_v44  ;;  %v1083_v62 = vadd.f32 %v1082_v37, %v1081_v43  ;;  %v2291_v7 = vpop.f32.mrb[22].mxu1  ;;  %v1088_v28 = vsel %vm24_vm1, %v938_v45, 0.0 }
 0x111   :  { %1000 = vst.msk [vmem:[%s2727_s2 + $0xa0] sm:$0xff] %vm24_vm1, %v936_v55  ;;  %v1084_v1 = vsel %vm24_vm1, %v936_v55, 0.0  ;;  %v1202_v2 = vmul.f32 %v936_v55, %v936_v55  ;;  %v939_v4 = vld [vmem:[#allocation2 + $0xb8] sm:$0xff]  ;;  %868 = vst.msk [vmem:[#allocation2 + $0xc0] sm:$0xff] %vm24_vm1, %v803_v47  ;;  %v804_v51 = vadd.f32 %v623_v59, %v114_v41  ;;  %v2294_v13 = vpop.f32.mrb[23].mxu1  ;;  %v1204_v15 = vmul.f32 %v938_v45, %v938_v45  ;;  %v118_v43 = vld [vmem:[#allocation2 + $0xe8] sm:$0xff] }
 0x112   :  { %1003 = vst.msk [vmem:[%s2727_s2 + $0xb8] sm:$0xff] %vm24_vm1, %v939_v4  ;;  %871 = vst.msk [vmem:[#allocation2 + $0xd8] sm:$0xff] %vm24_vm1, %v806_v56  ;;  %v1085_v8 = vadd.f32 %v1084_v1, %v1083_v62  ;;  %v1284_v9 = vadd.f32 %v1283_v46, %v1282_v61  ;;  %v937_v58 = vld [vmem:[#allocation2 + $0xa8] sm:$0xff]  ;;  %v1205_v29 = vmul.f32 %v939_v4, %v939_v4  ;;  %v1090_v47 = vsel %vm24_vm1, %v939_v4, 0.0 }
 0x113   :  { %v1285_v10 = vsel %vm24_vm1, %v1202_v2, 0.0  ;;  %1001 = vst.msk [vmem:[%s2727_s2 + $0xa8] sm:$0xff] %vm24_vm1, %v937_v58  ;;  %v1086_v16 = vsel %vm24_vm1, %v937_v58, 0.0  ;;  %v1203_v17 = vmul.f32 %v937_v58, %v937_v58  ;;  %869 = vst.msk [vmem:[#allocation2 + $0xc8] sm:$0xff] %vm24_vm1, %v804_v51  ;;  %v1289_v44 = vsel %vm24_vm1, %v1204_v15, 0.0 }
 0x114   :  { %v1286_v19 = vadd.f32 %v1285_v10, %v1284_v9  ;;  %v1087_v24 = vadd.f32 %v1086_v16, %v1085_v8  ;;  %v1291_v2 = vsel %vm24_vm1, %v1205_v29, 0.0 }
 0x115   :  { %v1547_v25 = vpop.f32.mrb[28].mxu0  ;;  %v1287_v30 = vsel %vm24_vm1, %v1203_v17, 0.0 }
 0x116   :  { %v809_v20 = vadd.f32 %v1547_v25, %v119_v12  ;;  %v636_v34 = vpop.f32.mrb[29].mxu0  ;;  %v1089_v35 = vadd.f32 %v1088_v28, %v1087_v24  ;;  %v1288_v36 = vadd.f32 %v1287_v30, %v1286_v19  ;;  %v2311_v37 = vpop.f32.mrb[24].mxu1 }
 0x117   :  { %v942_v38 = vld [vmem:[#allocation2 + $0xd0] sm:$0xff]  ;;  %v807_v39 = vadd.f32 %v636_v34, %v117_v18  ;;  %v1548_v41 = vpop.f32.mrb[30].mxu0  ;;  %v2319_v1 = vpop.f32.mrb[25].mxu1 }
 0x118   :  { %1006 = vst.msk [vmem:[%s2727_s2 + $0xd0] sm:$0xff] %vm24_vm1, %v942_v38  ;;  %v940_v45 = vld [vmem:[#allocation2 + $0xc0] sm:$0xff]  ;;  %874 = vst.msk [vmem:[#allocation2 + $0xf0] sm:$0xff] %vm24_vm1, %v809_v20  ;;  %v810_v48 = vadd.f32 %v1548_v41, %v120_v27  ;;  %v639_v32 = vpop.f32.mrb[31].mxu0  ;;  %v1290_v55 = vadd.f32 %v1289_v44, %v1288_v36  ;;  %v1091_v56 = vadd.f32 %v1090_v47, %v1089_v35  ;;  %v2327_v46 = vpop.f32.mrb[26].mxu1  ;;  %v1096_v19 = vsel %vm24_vm1, %v942_v38, 0.0 }
 0x119   :  { %1004 = vst.msk [vmem:[%s2727_s2 + $0xc0] sm:$0xff] %vm24_vm1, %v940_v45  ;;  %v1092_v59 = vsel %vm24_vm1, %v940_v45, 0.0  ;;  %v1206_v61 = vmul.f32 %v940_v45, %v940_v45  ;;  %v943_v62 = vld [vmem:[#allocation2 + $0xd8] sm:$0xff]  ;;  %872 = vst.msk [vmem:[#allocation2 + $0xe0] sm:$0xff] %vm24_vm1, %v807_v39  ;;  %v808_v4 = vadd.f32 %v639_v32, %v118_v43  ;;  %v2330_v58 = vpop.f32.mrb[27].mxu1  ;;  %v1208_v12 = vmul.f32 %v942_v38, %v942_v38 }
 0x11a   :  { %1007 = vst.msk [vmem:[%s2727_s2 + $0xd8] sm:$0xff] %vm24_vm1, %v943_v62  ;;  %875 = vst.msk [vmem:[#allocation2 + $0xf8] sm:$0xff] %vm24_vm1, %v810_v48  ;;  %v1093_v51 = vadd.f32 %v1092_v59, %v1091_v56  ;;  %v1292_v8 = vadd.f32 %v1291_v2, %v1290_v55  ;;  %v941_v10 = vld [vmem:[#allocation2 + $0xc8] sm:$0xff]  ;;  %v1209_v24 = vmul.f32 %v943_v62, %v943_v62  ;;  %v1098_v34 = vsel %vm24_vm1, %v943_v62, 0.0 }
 0x11b   :  { %v1293_v9 = vsel %vm24_vm1, %v1206_v61, 0.0  ;;  %1005 = vst.msk [vmem:[%s2727_s2 + $0xc8] sm:$0xff] %vm24_vm1, %v941_v10  ;;  %v1094_v15 = vsel %vm24_vm1, %v941_v10, 0.0  ;;  %v1207_v16 = vmul.f32 %v941_v10, %v941_v10  ;;  %873 = vst.msk [vmem:[#allocation2 + $0xe8] sm:$0xff] %vm24_vm1, %v808_v4  ;;  %v1214_v27 = vmul.f32 %v2045_v57, %v2045_v57  ;;  %v134_v59 = vld [vmem:[#allocation2 + $0x168] sm:$0xff]  ;;  %v139_v61 = vld [vmem:[#allocation2 + $0x190] sm:$0xff] }
 0x11c   :  { %v1294_v17 = vadd.f32 %v1293_v9, %v1292_v8  ;;  %v1095_v18 = vadd.f32 %v1094_v15, %v1093_v51  ;;  %v1297_v20 = vsel %vm24_vm1, %v1208_v12, 0.0  ;;  %v2350_v38 = vsel %vm24_vm1, %v2045_v57, 0.0  ;;  %v137_v10 = vld [vmem:[#allocation2 + $0x180] sm:$0xff]  ;;  %v140_v12 = vld [vmem:[#allocation2 + $0x198] sm:$0xff] }
 0x11d   :  { %v1295_v25 = vsel %vm24_vm1, %v1207_v16, 0.0  ;;  %v1299_v32 = vsel %vm24_vm1, %v1209_v24, 0.0  ;;  %v2367_v55 = vsel %vm24_vm1, %v1214_v27, 0.0  ;;  %v2371_v56 = vmul.f32 %v2063_v3, %v2063_v3  ;;  %v138_v24 = vld [vmem:[#allocation2 + $0x188] sm:$0xff]  ;;  %v141_v27 = vld [vmem:[#allocation2 + $0x1a0] sm:$0xff] }
 0x11e   :  { %v1097_v28 = vadd.f32 %v1096_v19, %v1095_v18  ;;  %v1296_v29 = vadd.f32 %v1295_v25, %v1294_v17  ;;  %v2352_v39 = vpop.f32.mrb[28].mxu1  ;;  %v143_v25 = vld [vmem:[#allocation2 + $0x1b0] sm:$0xff] }
 0x11f   :  { %v946_v30 = vld [vmem:[#allocation2 + $0xf0] sm:$0xff]  ;;  %v2359_v48 = vpop.f32.mrb[29].mxu1 }
 0x120   :  { %1010 = vst.msk [vmem:[%s2727_s2 + $0xf0] sm:$0xff] %vm24_vm1, %v946_v30  ;;  %v1212_v35 = vmul.f32 %v946_v30, %v946_v30  ;;  %v944_v36 = vld [vmem:[#allocation2 + $0xe0] sm:$0xff]  ;;  %v1298_v41 = vadd.f32 %v1297_v20, %v1296_v29  ;;  %v1099_v43 = vadd.f32 %v1098_v34, %v1097_v28  ;;  %v1580_v62 = vpop.f32.mrb[30].mxu1  ;;  %v1104_v2 = vsel %vm24_vm1, %v946_v30, 0.0  ;;  %v144_v34 = vld [vmem:[#allocation2 + $0x1b8] sm:$0xff] }
 0x121   :  { %1008 = vst.msk [vmem:[%s2727_s2 + $0xe0] sm:$0xff] %vm24_vm1, %v944_v36  ;;  %v1100_v44 = vsel %vm24_vm1, %v944_v36, 0.0  ;;  %v1210_v47 = vmul.f32 %v944_v36, %v944_v36  ;;  %v947_v45 = vld [vmem:[#allocation2 + $0xf8] sm:$0xff]  ;;  %v767_v15 = vpop.f32.mrb[31].mxu1  ;;  %v824_v30 = vadd.f32 %v2142_v33, %v134_v59  ;;  %v829_v20 = vadd.f32 %v2185_v6, %v139_v61  ;;  %v147_v36 = vld [vmem:[#allocation2 + $0x1d0] sm:$0xff]  ;;  %v149_v59 = vld [vmem:[#allocation2 + $0x1e0] sm:$0xff] }
 0x122   :  { %1011 = vst.msk [vmem:[%s2727_s2 + $0xf8] sm:$0xff] %vm24_vm1, %v947_v45  ;;  %v1213_v57 = vmul.f32 %v947_v45, %v947_v45  ;;  %v1101_v4 = vadd.f32 %v1100_v44, %v1099_v43  ;;  %v1300_v51 = vadd.f32 %v1299_v32, %v1298_v41  ;;  %v945_v9 = vld [vmem:[#allocation2 + $0xe8] sm:$0xff]  ;;  %v1305_v16 = vsel %vm24_vm1, %v1212_v35, 0.0  ;;  %v148_v32 = vld [vmem:[#allocation2 + $0x1d8] sm:$0xff] }
 0x123   :  { %v1301_v8 = vsel %vm24_vm1, %v1210_v47, 0.0  ;;  %v1106_v17 = vsel %vm24_vm1, %v947_v45, 0.0  ;;  %1009 = vst.msk [vmem:[%s2727_s2 + $0xe8] sm:$0xff] %vm24_vm1, %v945_v9  ;;  %v1102_v18 = vsel %vm24_vm1, %v945_v9, 0.0  ;;  %v1211_v19 = vmul.f32 %v945_v9, %v945_v9  ;;  %v142_v35 = vld [vmem:[#allocation2 + $0x1a8] sm:$0xff]  ;;  %v145_v45 = vld [vmem:[#allocation2 + $0x1c0] sm:$0xff] }
 0x124   :  { %v1302_v28 = vadd.f32 %v1301_v8, %v1300_v51  ;;  %v1103_v29 = vadd.f32 %v1102_v18, %v1101_v4  ;;  %v1307_v41 = vsel %vm24_vm1, %v1213_v57, 0.0  ;;  %v827_v44 = vadd.f32 %v2198_v11, %v137_v10  ;;  %v146_v9 = vld [vmem:[#allocation2 + $0x1c8] sm:$0xff]  ;;  %889 = vst.msk [vmem:[#allocation2 + $0x168] sm:$0xff] %vm24_vm1, %v824_v30  ;;  %894 = vst.msk [vmem:[#allocation2 + $0x190] sm:$0xff] %vm24_vm1, %v829_v20  ;;  %v151_v57 = vld [vmem:[#allocation2 + $0x1f0] sm:$0xff] }
 0x125   :  { %v1303_v43 = vsel %vm24_vm1, %v1211_v19, 0.0  ;;  %v830_v47 = vadd.f32 %v2206_v14, %v140_v12  ;;  %v828_v33 = vadd.f32 %v2218_v23, %v138_v24  ;;  %v833_v6 = vadd.f32 %v2275_v60, %v143_v25  ;;  %v152_v61 = vld [vmem:[#allocation2 + $0x1f8] sm:$0xff]  ;;  %v150_v10 = vld [vmem:[#allocation2 + $0x1e8] sm:$0xff] }
 0x126   :  { %v1105_v51 = vadd.f32 %v1104_v2, %v1103_v29  ;;  %v1304_v4 = vadd.f32 %v1303_v43, %v1302_v28  ;;  %892 = vst.msk [vmem:[#allocation2 + $0x180] sm:$0xff] %vm24_vm1, %v827_v44  ;;  %v831_v11 = vadd.f32 %v2283_v40, %v141_v27  ;;  %v834_v14 = vadd.f32 %v2291_v7, %v144_v34 }
 0x127   :  { %895 = vst.msk [vmem:[#allocation2 + $0x198] sm:$0xff] %vm24_vm1, %v830_v47  ;;  %v832_v2 = vadd.f32 %v2294_v13, %v142_v35  ;;  %v837_v8 = vadd.f32 %v2311_v37, %v147_v36  ;;  %893 = vst.msk [vmem:[#allocation2 + $0x188] sm:$0xff] %vm24_vm1, %v828_v33  ;;  %v835_v60 = vadd.f32 %v2319_v1, %v145_v45  ;;  %v1110_v19 = vsel %vm24_vm1, %v2063_v3, 0.0 }
 0x128   :  { %v1306_v12 = vadd.f32 %v1305_v16, %v1304_v4  ;;  %v1107_v23 = vadd.f32 %v1106_v17, %v1105_v51  ;;  %898 = vst.msk [vmem:[#allocation2 + $0x1b0] sm:$0xff] %vm24_vm1, %v833_v6  ;;  %v838_v18 = vadd.f32 %v2327_v46, %v148_v32  ;;  %896 = vst.msk [vmem:[#allocation2 + $0x1a0] sm:$0xff] %vm24_vm1, %v831_v11  ;;  %v1311_v3 = vsel %vm24_vm1, %v2371_v56, 0.0 }
 0x129   :  { %899 = vst.msk [vmem:[#allocation2 + $0x1b8] sm:$0xff] %vm24_vm1, %v834_v14  ;;  %897 = vst.msk [vmem:[#allocation2 + $0x1a8] sm:$0xff] %vm24_vm1, %v832_v2  ;;  %v836_v40 = vadd.f32 %v2330_v58, %v146_v9  ;;  %v841_v7 = vadd.f32 %v2352_v39, %v151_v57  ;;  %v839_v13 = vadd.f32 %v2359_v48, %v149_v59  ;;  %v1112_v39 = vsel %vm24_vm1, %v2028_v50, 0.0 }
 0x12a   :  { %902 = vst.msk [vmem:[#allocation2 + $0x1d0] sm:$0xff] %vm24_vm1, %v837_v8  ;;  %v842_v37 = vadd.f32 %v1580_v62, %v152_v61  ;;  %v1109_v16 = vadd.f32 %v2350_v38, %v1107_v23  ;;  %v1308_v1 = vadd.f32 %v1307_v41, %v1306_v12  ;;  %900 = vst.msk [vmem:[#allocation2 + $0x1c0] sm:$0xff] %vm24_vm1, %v835_v60  ;;  %v1114_v28 = vsel %vm24_vm1, %v2054_v63, 0.0 }
 0x12b   :  { %903 = vst.msk [vmem:[#allocation2 + $0x1d8] sm:$0xff] %vm24_vm1, %v838_v18  ;;  %v840_v46 = vadd.f32 %v767_v15, %v150_v10  ;;  %v1216_v17 = vmul.f32 %v2028_v50, %v2028_v50  ;;  %901 = vst.msk [vmem:[#allocation2 + $0x1c8] sm:$0xff] %vm24_vm1, %v836_v40  ;;  %v1217_v48 = vmul.f32 %v2054_v63, %v2054_v63  ;;  %v2430_v15 = vld [vmem:[#allocation2 + $0x168] sm:$0xff]  ;;  %v2432_v24 = vld [vmem:[#allocation2 + $0x190] sm:$0xff]  ;;  %v1116_v29 = vsel %vm24_vm1, %v2152_v54, 0.0 }
 0x12c   :  { %906 = vst.msk [vmem:[#allocation2 + $0x1f0] sm:$0xff] %vm24_vm1, %v841_v7  ;;  %904 = vst.msk [vmem:[#allocation2 + $0x1e0] sm:$0xff] %vm24_vm1, %v839_v13  ;;  %v1310_v58 = vadd.f32 %v2367_v55, %v1308_v1  ;;  %v1111_v38 = vadd.f32 %v1110_v19, %v1109_v16  ;;  %v1218_v62 = vmul.f32 %v2152_v54, %v2152_v54  ;;  %v1118_v59 = vsel %vm24_vm1, %v2181_v5, 0.0 }
 0x12d   :  { %907 = vst.msk [vmem:[#allocation2 + $0x1f8] sm:$0xff] %vm24_vm1, %v842_v37  ;;  %905 = vst.msk [vmem:[#allocation2 + $0x1e8] sm:$0xff] %vm24_vm1, %v840_v46  ;;  %v2444_v50 = vld [vmem:[#allocation2 + $0x180] sm:$0xff]  ;;  %v1313_v27 = vsel %vm24_vm1, %v1216_v17, 0.0  ;;  %v1315_v41 = vsel %vm24_vm1, %v1217_v48, 0.0  ;;  %v1219_v44 = vmul.f32 %v2181_v5, %v2181_v5  ;;  %v1220_v57 = vmul.f32 %v2150_v53, %v2150_v53 }
 0x12e   :  { %v1113_v55 = vadd.f32 %v1112_v39, %v1111_v38  ;;  %v1312_v25 = vadd.f32 %v1311_v3, %v1310_v58  ;;  %1025 = vst.msk [vmem:[%s2727_s2 + $0x168] sm:$0xff] %vm24_vm1, %v2430_v15  ;;  %1030 = vst.msk [vmem:[%s2727_s2 + $0x190] sm:$0xff] %vm24_vm1, %v2432_v24  ;;  %v2446_v56 = vld [vmem:[#allocation2 + $0x198] sm:$0xff]  ;;  %v2463_v30 = vld [vmem:[#allocation2 + $0x188] sm:$0xff]  ;;  %v1317_v43 = vsel %vm24_vm1, %v1218_v62, 0.0  ;;  %v1120_v2 = vsel %vm24_vm1, %v2150_v53, 0.0 }
 0x12f   :  { %1028 = vst.msk [vmem:[%s2727_s2 + $0x180] sm:$0xff] %vm24_vm1, %v2444_v50  ;;  %1031 = vst.msk [vmem:[%s2727_s2 + $0x198] sm:$0xff] %vm24_vm1, %v2446_v56  ;;  %v2465_v20 = vld [vmem:[#allocation2 + $0x1b0] sm:$0xff]  ;;  %v2472_v54 = vld [vmem:[#allocation2 + $0x1a0] sm:$0xff]  ;;  %v1221_v8 = vmul.f32 %v2166_v0, %v2166_v0  ;;  %v1319_v10 = vsel %vm24_vm1, %v1219_v44, 0.0  ;;  %v1222_v12 = vmul.f32 %v2216_v22, %v2216_v22  ;;  %v1321_v18 = vsel %vm24_vm1, %v1220_v57, 0.0 }
 0x130   :  { %v1314_v63 = vadd.f32 %v1313_v27, %v1312_v25  ;;  %v1115_v34 = vadd.f32 %v1114_v28, %v1113_v55  ;;  %1029 = vst.msk [vmem:[%s2727_s2 + $0x188] sm:$0xff] %vm24_vm1, %v2463_v30  ;;  %v2474_v35 = vld [vmem:[#allocation2 + $0x1a8] sm:$0xff]  ;;  %v2476_v36 = vld [vmem:[#allocation2 + $0x1b8] sm:$0xff]  ;;  %1034 = vst.msk [vmem:[%s2727_s2 + $0x1b0] sm:$0xff] %vm24_vm1, %v2465_v20  ;;  %v1122_v40 = vsel %vm24_vm1, %v2166_v0, 0.0  ;;  %v1124_v7 = vsel %vm24_vm1, %v2216_v22, 0.0 }
 0x131   :  { %1032 = vst.msk [vmem:[%s2727_s2 + $0x1a0] sm:$0xff] %vm24_vm1, %v2472_v54  ;;  %v2492_v47 = vld [vmem:[#allocation2 + $0x1c0] sm:$0xff]  ;;  %v2494_v45 = vld [vmem:[#allocation2 + $0x1d0] sm:$0xff]  ;;  %1033 = vst.msk [vmem:[%s2727_s2 + $0x1a8] sm:$0xff] %vm24_vm1, %v2474_v35  ;;  %v1323_v37 = vsel %vm24_vm1, %v1221_v8, 0.0  ;;  %v1325_v16 = vsel %vm24_vm1, %v1222_v12, 0.0  ;;  %v1223_v1 = vmul.f32 %v2233_v31, %v2233_v31  ;;  %v1224_v19 = vmul.f32 %v2214_v21, %v2214_v21 }
 0x132   :  { %v2496_v32 = vld [vmem:[#allocation2 + $0x1d8] sm:$0xff]  ;;  %1035 = vst.msk [vmem:[%s2727_s2 + $0x1b8] sm:$0xff] %vm24_vm1, %v2476_v36  ;;  %v1117_v9 = vadd.f32 %v1116_v29, %v1115_v34  ;;  %v1316_v51 = vadd.f32 %v1315_v41, %v1314_v63  ;;  %v2508_v4 = vld [vmem:[#allocation2 + $0x1c8] sm:$0xff]  ;;  %1036 = vst.msk [vmem:[%s2727_s2 + $0x1c0] sm:$0xff] %vm24_vm1, %v2492_v47  ;;  %v1126_v0 = vsel %vm24_vm1, %v2233_v31, 0.0  ;;  %v1128_v22 = vsel %vm24_vm1, %v2214_v21, 0.0 }
 0x133   :  { %v2510_v33 = vld [vmem:[#allocation2 + $0x1e0] sm:$0xff]  ;;  %v2512_v6 = vld [vmem:[#allocation2 + $0x1f0] sm:$0xff]  ;;  %1038 = vst.msk [vmem:[%s2727_s2 + $0x1d0] sm:$0xff] %vm24_vm1, %v2494_v45  ;;  %1039 = vst.msk [vmem:[%s2727_s2 + $0x1d8] sm:$0xff] %vm24_vm1, %v2496_v32  ;;  %v1225_v39 = vmul.f32 %v2231_v26, %v2231_v26  ;;  %v1327_v48 = vsel %vm24_vm1, %v1223_v1, 0.0  ;;  %v1226_v3 = vmul.f32 %v2254_v49, %v2254_v49  ;;  %v1329_v25 = vsel %vm24_vm1, %v1224_v19, 0.0 }
 0x134   :  { %v2533_v61 = vld [vmem:[#allocation2 + $0x1e8] sm:$0xff]  ;;  %v2535_v11 = vld [vmem:[#allocation2 + $0x1f8] sm:$0xff]  ;;  %1037 = vst.msk [vmem:[%s2727_s2 + $0x1c8] sm:$0xff] %vm24_vm1, %v2508_v4  ;;  %1040 = vst.msk [vmem:[%s2727_s2 + $0x1e0] sm:$0xff] %vm24_vm1, %v2510_v33  ;;  %v1318_v5 = vadd.f32 %v1317_v43, %v1316_v51  ;;  %v1119_v14 = vadd.f32 %v1118_v59, %v1117_v9  ;;  %v1130_v31 = vsel %vm24_vm1, %v2231_v26, 0.0  ;;  %v1132_v27 = vsel %vm24_vm1, %v2254_v49, 0.0 }
 0x135   :  { %1042 = vst.msk [vmem:[%s2727_s2 + $0x1f0] sm:$0xff] %vm24_vm1, %v2512_v6  ;;  %1041 = vst.msk [vmem:[%s2727_s2 + $0x1e8] sm:$0xff] %vm24_vm1, %v2533_v61  ;;  %v1331_v29 = vsel %vm24_vm1, %v1225_v39, 0.0  ;;  %v1333_v63 = vsel %vm24_vm1, %v1226_v3, 0.0  ;;  %v1227_v34 = vmul.f32 %v2430_v15, %v2430_v15  ;;  %v1228_v44 = vmul.f32 %v2247_v42, %v2247_v42 }
 0x136   :  { %1043 = vst.msk [vmem:[%s2727_s2 + $0x1f8] sm:$0xff] %vm24_vm1, %v2535_v11  ;;  %v1121_v23 = vadd.f32 %v1120_v2, %v1119_v14  ;;  %v1320_v60 = vadd.f32 %v1319_v10, %v1318_v5  ;;  %v1134_v26 = vsel %vm24_vm1, %v2430_v15, 0.0  ;;  %v1136_v49 = vsel %vm24_vm1, %v2247_v42, 0.0  ;;  %s1671_s2 = smov [#allocation3]  }
 0x137   :  { %v1229_v57 = vmul.f32 %v2256_v52, %v2256_v52  ;;  %v1335_v59 = vsel %vm24_vm1, %v1227_v34, 0.0  ;;  %v1230_v5 = vmul.f32 %v2444_v50, %v2444_v50  ;;  %v1337_v8 = vsel %vm24_vm1, %v1228_v44, 0.0  ;;  %s1389_s17 = sshll.u32 %s1671_s2, 4  ;;  %s1390_s17 = int_to_ptr.vmem [resolvable:$true] %s1389_s17 }
 0x138   :  { %v1322_v13 = vadd.f32 %v1321_v18, %v1320_v60  ;;  %v1123_v53 = vadd.f32 %v1122_v40, %v1121_v23  ;;  %v1138_v15 = vsel %vm24_vm1, %v2256_v52, 0.0  ;;  %v1140_v10 = vsel %vm24_vm1, %v2444_v50, 0.0  ;;  %s1622_s20 = scalar_lea.vmem %s1390_s17, 16  ;;  %s1626_s1 = scalar_lea.vmem %s1390_s17, 32 }
 0x139   :  { %v1339_v23 = vsel %vm24_vm1, %v1229_v57, 0.0  ;;  %v1341_v60 = vsel %vm24_vm1, %v1230_v5, 0.0  ;;  %v1231_v18 = vmul.f32 %v2463_v30, %v2463_v30  ;;  %v1142_v52 = vsel %vm24_vm1, %v2463_v30, 0.0  ;;  %p1623_p0 = scmp.ne.s32.totalorder %s1390_s17, %s1622_s20  ;;  %p1627_p1 = scmp.lt.s32.totalorder %s1390_s17, %s1390_s17 }
 0x13a   :  { %v1125_v46 = vadd.f32 %v1124_v7, %v1123_v53  ;;  %v1324_v17 = vadd.f32 %v1323_v37, %v1322_v13  ;;  %v1232_v13 = vmul.f32 %v2432_v24, %v2432_v24  ;;  %v1144_v50 = vsel %vm24_vm1, %v2432_v24, 0.0  ;;  %p1628_p2 = scmp.lt.s32.totalorder %s1626_s1, %s1622_s20 }
 0x13b   :  { %v1343_v1 = vsel %vm24_vm1, %v1231_v18, 0.0  ;;  %v1148_v30 = vsel %vm24_vm1, %v2472_v54, 0.0  ;;  %v1156_v34 = vsel %vm24_vm1, %v2492_v47, 0.0  ;;  %v1239_v44 = vmul.f32 %v2508_v4, %v2508_v4 }
 0x13c   :  { %v1326_v58 = vadd.f32 %v1325_v16, %v1324_v17  ;;  %v1127_v38 = vadd.f32 %v1126_v0, %v1125_v46  ;;  %v1233_v16 = vmul.f32 %v2446_v56, %v2446_v56  ;;  %v1234_v46 = vmul.f32 %v2472_v54, %v2472_v54  ;;  %p1629_p3 = por %p1628_p2, %p1627_p1 }
 0x13d   :  { %v1146_v0 = vsel %vm24_vm1, %v2446_v56, 0.0  ;;  %v1236_v56 = vmul.f32 %v2465_v20, %v2465_v20  ;;  %v1158_v57 = vsel %vm24_vm1, %v2508_v4, 0.0  ;;  %v1160_v5 = vsel %vm24_vm1, %v2494_v45, 0.0 }
 0x13e   :  { %v1129_v62 = vadd.f32 %v1128_v22, %v1127_v38  ;;  %v1328_v55 = vadd.f32 %v1327_v48, %v1326_v58  ;;  %v1345_v58 = vsel %vm24_vm1, %v1232_v13, 0.0  ;;  %v1235_v22 = vmul.f32 %v2474_v35, %v2474_v35  ;;  %p1630_p4 = pnand %p1629_p3, %p1623_p0 }
 0x13f   :  { %v1347_v39 = vsel %vm24_vm1, %v1233_v16, 0.0  ;;  %v1349_v48 = vsel %vm24_vm1, %v1234_v46, 0.0  ;;  %v1162_v4 = vsel %vm24_vm1, %v2496_v32, 0.0 }
 0x140   :  { %v1330_v28 = vadd.f32 %v1329_v25, %v1328_v55  ;;  %v1131_v21 = vadd.f32 %v1130_v31, %v1129_v62  ;;  %v1150_v55 = vsel %vm24_vm1, %v2474_v35, 0.0  ;;  %v1152_v31 = vsel %vm24_vm1, %v2465_v20, 0.0 }
 0x141   :  { %v1154_v35 = vsel %vm24_vm1, %v2476_v36, 0.0 }
 0x142   :  { %v1133_v41 = vadd.f32 %v1132_v27, %v1131_v21  ;;  %v1332_v43 = vadd.f32 %v1331_v29, %v1330_v28  ;;  %v1237_v27 = vmul.f32 %v2476_v36, %v2476_v36  ;;  %v1238_v28 = vmul.f32 %v2492_v47, %v2492_v47 }
 0x143   :  { %v1351_v21 = vsel %vm24_vm1, %v1235_v22, 0.0  ;;  %v1240_v36 = vmul.f32 %v2494_v45, %v2494_v45 }
 0x144   :  { %v1334_v9 = vadd.f32 %v1333_v63, %v1332_v43  ;;  %v1135_v51 = vadd.f32 %v1134_v26, %v1133_v41  ;;  %v1353_v41 = vsel %vm24_vm1, %v1236_v56, 0.0  ;;  %v1355_v26 = vsel %vm24_vm1, %v1237_v27, 0.0  ;;  %v1044_v56 = vld [vmem:[#allocation3] sm:$0x1] }
 0x146   :  { %v1137_v14 = vadd.f32 %v1136_v49, %v1135_v51  ;;  %v1336_v2 = vadd.f32 %v1335_v59, %v1334_v9  ;;  %v1357_v9 = vsel %vm24_vm1, %v1238_v28, 0.0 }
 0x148   :  { %v1338_v12 = vadd.f32 %v1337_v8, %v1336_v2  ;;  %v1139_v42 = vadd.f32 %v1138_v15, %v1137_v14  ;;  %v1241_v14 = vmul.f32 %v2496_v32, %v2496_v32  ;;  %v1242_v2 = vmul.f32 %v2510_v33, %v2510_v33 }
 0x149   :  { %v1359_v8 = vsel %vm24_vm1, %v1239_v44, 0.0  ;;  %v1244_v32 = vmul.f32 %v2512_v6, %v2512_v6 }
 0x14a   :  { %v1141_v40 = vadd.f32 %v1140_v10, %v1139_v42  ;;  %v1340_v7 = vadd.f32 %v1339_v23, %v1338_v12  ;;  %v1164_v12 = vsel %vm24_vm1, %v2510_v33, 0.0  ;;  %v1361_v42 = vsel %vm24_vm1, %v1240_v36, 0.0 }
 0x14b   :  { %v1363_v18 = vsel %vm24_vm1, %v1241_v14, 0.0 }
 0x14c   :  { %v1342_v53 = vadd.f32 %v1341_v60, %v1340_v7  ;;  %v1143_v37 = vadd.f32 %v1142_v52, %v1141_v40  ;;  %v1243_v60 = vmul.f32 %v2533_v61, %v2533_v61  ;;  %v1365_v40 = vsel %vm24_vm1, %v1242_v2, 0.0 }
 0x14d   :  { %v1166_v52 = vsel %vm24_vm1, %v2533_v61, 0.0  ;;  %v1369_v61 = vsel %vm24_vm1, %v1244_v32, 0.0 }
 0x14e   :  { %v1145_v17 = vadd.f32 %v1144_v50, %v1143_v37  ;;  %v1344_v19 = vadd.f32 %v1343_v1, %v1342_v53  ;;  %v1168_v37 = vsel %vm24_vm1, %v2512_v6, 0.0  ;;  %v1245_v50 = vmul.f32 %v2535_v11, %v2535_v11 }
 0x14f   :  { %v1367_v16 = vsel %vm24_vm1, %v1243_v60, 0.0 }
 0x150   :  { %v1147_v38 = vadd.f32 %v1146_v0, %v1145_v17  ;;  %v1346_v24 = vadd.f32 %v1345_v58, %v1344_v19  ;;  %v1170_v17 = vsel %vm24_vm1, %v2535_v11, 0.0 }
 0x152   :  { %v1149_v3 = vadd.f32 %v1148_v30, %v1147_v38  ;;  %v1348_v62 = vadd.f32 %v1347_v39, %v1346_v24  ;;  %v1371_v30 = vsel %vm24_vm1, %v1245_v50, 0.0 }
 0x154   :  { %v1151_v54 = vadd.f32 %v1150_v55, %v1149_v3  ;;  %v1350_v25 = vadd.f32 %v1349_v48, %v1348_v62 }
 0x156   :  { %v1153_v29 = vadd.f32 %v1152_v31, %v1151_v54  ;;  %v1352_v63 = vadd.f32 %v1351_v21, %v1350_v25  ;;  %v1181_v25 = vld [vmem:[#allocation5] sm:$0x1] }
 0x158   :  { %v1155_v43 = vadd.f32 %v1154_v35, %v1153_v29  ;;  %v1354_v20 = vadd.f32 %v1353_v41, %v1352_v63 }
 0x15a   :  { %v1157_v51 = vadd.f32 %v1156_v34, %v1155_v43  ;;  %v1356_v49 = vadd.f32 %v1355_v26, %v1354_v20 }
 0x15c   :  { %v1159_v47 = vadd.f32 %v1158_v57, %v1157_v51  ;;  %v1358_v59 = vadd.f32 %v1357_v9, %v1356_v49 }
 0x15e   :  { %v1161_v15 = vadd.f32 %v1160_v5, %v1159_v47  ;;  %v1360_v10 = vadd.f32 %v1359_v8, %v1358_v59 }
 0x160   :  { %v1163_v23 = vadd.f32 %v1162_v4, %v1161_v15  ;;  %v1362_v45 = vadd.f32 %v1361_v42, %v1360_v10 }
 0x162   :  { %v1165_v7 = vadd.f32 %v1164_v12, %v1163_v23  ;;  %v1364_v13 = vadd.f32 %v1363_v18, %v1362_v45 }
 0x164   :  { %v1167_v33 = vadd.f32 %v1166_v52, %v1165_v7  ;;  %v1366_v53 = vadd.f32 %v1365_v40, %v1364_v13 }
 0x166   :  { %v1169_v1 = vadd.f32 %v1168_v37, %v1167_v33  ;;  %v1368_v46 = vadd.f32 %v1367_v16, %v1366_v53 }
 0x168   :  { %v1171_v19 = vadd.f32 %v1170_v17, %v1169_v1  ;;  %v1370_v0 = vadd.f32 %v1369_v61, %v1368_v46 }
 0x16a   :  { %v1172_v58 = vrot.slane %v1171_v19, 4  ;;  %v1372_v38 = vadd.f32 %v1371_v30, %v1370_v0 }
 0x16c   :  { %v1173_v24 = vadd.f32 %v1172_v58, %v1171_v19  ;;  %v1373_v6 = vrot.slane %v1372_v38, 4 }
 0x16e   :  { %v1174_v22 = vrot.slane %v1173_v24, 2  ;;  %v1374_v39 = vadd.f32 %v1373_v6, %v1372_v38 }
 0x170   :  { %v1175_v48 = vadd.f32 %v1174_v22, %v1173_v24  ;;  %v1375_v3 = vrot.slane %v1374_v39, 2 }
 0x172   :  { %v1176_v62 = vrot.slane %v1175_v48, 1  ;;  %v1376_v55 = vadd.f32 %v1375_v3, %v1374_v39 }
 0x174   :  { %v1177_v11 = vadd.f32 %v1176_v62, %v1175_v48  ;;  %v1377_v54 = vrot.slane %v1376_v55, 1 }
 0x176   :  { %v1178_v31 = vadd.f32 %v1177_v11, %v1044_v56  ;;  %v1378_v27 = vadd.f32 %v1377_v54, %v1376_v55 }
 0x178   :  { %1180 = vst.msk [vmem:[#allocation3] sm:$0x1] %vm910_vm2, %v1178_v31  ;;  %v1379_v28 = vadd.f32 %v1378_v27, %v1181_v25 }
 0x179   :  { %1633 = shalt.err (!%p1630_p4)
}
 0x17a   :  { %s1634_s23 = scalar_lea.hbm %s2728_s3, 16 }
 0x17b   :  { %p1635_p5 = scmp.ne.s32.totalorder %s2728_s3, %s1634_s23  ;;  %p1638_p6 = scmp.lt.u32.totalorder %s1634_s23, %s2728_s3 }
 0x17d   :  { %p1640_p7 = pnand %p1638_p6, %p1635_p5 }
 0x17f   :  { %1643 = shalt.err (!%p1640_p7)
}
 0x180   :  { %1392 = dma.vmem_to_hbm [thread:$0]  %s1390_s17, 16, %s2728_s3, [#allocation4]   ;;  %1380 = vst.msk [vmem:[#allocation5] sm:$0x1] %vm910_vm2, %v1379_v28 }
 0x181   :  { %s1644_s29 = scalar_lea.vmem %s2692_s19, 16  ;;  %s1648_s30 = scalar_lea.vmem %s2692_s19, 32 }
 0x182   :  { %p1645_p8 = scmp.ne.s32.totalorder %s2692_s19, %s1644_s29  ;;  %p1649_p9 = scmp.lt.s32.totalorder %s2692_s19, %s2692_s19 }
 0x183   :  { %p1650_p10 = scmp.lt.s32.totalorder %s1648_s30, %s1644_s29 }
 0x185   :  { %p1651_p11 = por %p1650_p10, %p1649_p9 }
 0x187   :  { %p1652_p12 = pnand %p1651_p11, %p1645_p8 }
 0x189   :  { %1655 = shalt.err (!%p1652_p12)
}
 0x18a   :  { %s1656_s7 = scalar_lea.hbm %s2729_s4, 16 }
 0x18b   :  { %p1657_p13 = scmp.ne.s32.totalorder %s2729_s4, %s1656_s7  ;;  %p1660_p0 = scmp.lt.u32.totalorder %s1656_s7, %s2729_s4 }
 0x18d   :  { %p1662_p1 = pnand %p1660_p0, %p1657_p13 }
 0x18f   :  { %1665 = shalt.err (!%p1662_p1)
}
 0x190   :  { %1402 = dma.vmem_to_hbm [thread:$0]  %s2692_s19, 16, %s2729_s4, [#allocation6]  }
 0x191   :  { %1666 = dma.done.wait [#allocation4], 16  }
 0x192   :  { %1667 = vsyncadd [#allocation4], 4294967280 }
 0x193   :  { %1668 = dma.done.wait [#allocation6], 16  }
 0x194   :  { %1669 = vsyncadd [#allocation6], 4294967280 }
 0x195   :  { %1411 = vsyncpa [#allocation4], 1 }
 0x196   :  { %1412 = vsyncpa [#allocation6], 1 }

</bundles_post_ra>
